<compile_context>
chip_gen: v7x
topology: tpu7x:2x2x1
jax: 0.10.0
libtpu: 0.0.40
codegen_flags: <defaults>
</compile_context>

<pallas_src>
import functools

import jax
import jax.numpy as jnp
from jax import lax
from jax.experimental import pallas as pl
from jax.experimental.pallas import tpu as pltpu


# Cast MXU operands here (set to jnp.bfloat16 on v6e/v7x for ~2x matmul
# throughput and half the weight/tap VMEM bytes).  f32 is the default to keep
# exact PyTorch-equivalent numerics.
_MM_DTYPE = jnp.float32


def _mm(a, b):
    return jnp.dot(a.astype(_MM_DTYPE), b.astype(_MM_DTYPE),
                   preferred_element_type=jnp.float32)


# --------------------------------------------------------------------------
# Kernel 1: batched n = p @ u  (grid over batch, unrolled loop over C groups)
# --------------------------------------------------------------------------

def _bmm_kernel(p_ref, u_ref, o_ref):
    for g in range(p_ref.shape[0]):         # static unroll: C tiny MXU dots
        o_ref[g] = _mm(p_ref[g], u_ref[g])


def batched_matmul(p, u, groups_per_block):
    G, H, _ = p.shape
    N = u.shape[2]
    nblk = G // groups_per_block
    return pl.pallas_call(
        _bmm_kernel,
        out_shape=jax.ShapeDtypeStruct((G, H, N), jnp.float32),
        grid=(nblk,),
        in_specs=[pl.BlockSpec((groups_per_block, H, H), lambda b: (b, 0, 0)),
                  pl.BlockSpec((groups_per_block, H, N), lambda b: (b, 0, 0))],
        out_specs=pl.BlockSpec((groups_per_block, H, N), lambda b: (b, 0, 0)),
        compiler_params=pltpu.CompilerParams(
            dimension_semantics=("parallel",)),
    )(p, u)


# --------------------------------------------------------------------------
# Kernel 2: frequency-domain complex MLP (lane-dense, stacked real weights)
# --------------------------------------------------------------------------

def _freq_kernel(z_ref, g1_ref, g2_ref, o_ref):
    # z: (2C, M) stacked [real; imag], M = B*H*Wf on lanes.
    # Each complex matmul is ONE real dot thanks to [[wr,-wi],[wi,wr]] weights.
    h = jnp.maximum(_mm(g1_ref[...], z_ref[...]), 0.0)   # complex mm #1 + ReLU(re/im)
    o_ref[...] = _mm(g2_ref[...], h)                     # complex mm #2


def freq_mlp(z, g1, g2):
    return pl.pallas_call(
        _freq_kernel,
        out_shape=jax.ShapeDtypeStruct(z.shape, jnp.float32),
    )(z, g1, g2)


# --------------------------------------------------------------------------
# Kernel 3: fused channel-attention -> conv1 -> ReLU -> conv2 -> merge
# --------------------------------------------------------------------------

def _fused_block_kernel(x_ref, y2_ref, mask_ref, caw1_ref, cab1_ref,
                        caw2_ref, cab2_ref, cw1_ref, cw2_ref, o_ref, *, W):
    x = x_ref[0]             # (C2, HW)
    y2 = y2_ref[0]           # (C2, HW)  frequency-branch output
    mask = mask_ref[...]     # (9, HW)   conv boundary masks
    HW = x.shape[1]

    # ---- channel attention: AdaptiveAvgPool -> 1x1 -> ReLU -> 1x1 -> sigmoid
    # pooled value broadcast along lanes so both 1x1 convs are dense MXU dots
    pooled = jnp.broadcast_to(jnp.mean(x, axis=1, keepdims=True), x.shape)
    h = jnp.maximum(_mm(caw1_ref[...], pooled) + cab1_ref[...], 0.0)   # (Cr, HW)
    s = jax.nn.sigmoid(_mm(caw2_ref[...], h) + cab2_ref[...])          # (C2, HW)
    xs = x * s

    # ---- 9-tap matrix built in-VMEM: masked lane rolls (no HBM im2col) ----
    def tap_matrix(z):
        rows = []
        k = 0
        for oy in (-1, 0, 1):
            for ox in (-1, 0, 1):
                d = oy * W + ox
                zz = z if d == 0 else jnp.roll(z, (-d) % HW, axis=1)  # static shift -> XLU
                rows.append(zz * mask[k:k + 1, :])       # zero the wrapped lanes
                k += 1
        return jnp.concatenate(rows, axis=0)             # (9*C2, HW), sublane-aligned

    # ---- conv1 as a single K=9*Cin MXU dot, ReLU, then conv2 ----
    y = jnp.maximum(_mm(cw1_ref[...], tap_matrix(xs)), 0.0)
    y1 = _mm(cw2_ref[...], tap_matrix(y))                # (C2, HW)

    # ---- merge: y1 + y1_max * tanh(y2 / y1_max) + x ----
    y1m = jnp.maximum(jnp.max(y1, axis=0, keepdims=True), 1.0)   # max over channels
    inv = pl.reciprocal(y1m, approx=True)                        # EUP, frees VALU
    o_ref[0] = y1 + y1m * jnp.tanh(y2 * inv) + x


def _conv_boundary_mask(H, W):
    hh = jnp.arange(H)[:, None]
    ww = jnp.arange(W)[None, :]
    rows = []
    for oy in (-1, 0, 1):
        for ox in (-1, 0, 1):
            m = ((hh + oy >= 0) & (hh + oy < H) &
                 (ww + ox >= 0) & (ww + ox < W))
            rows.append(m.astype(jnp.float32).reshape(H * W))
    return jnp.stack(rows, axis=0)           # (9, HW), constant under jit


def fused_spatial_combine(x_flat, y2_flat, mask, caw1, cab1, caw2, cab2,
                          cw1, cw2, W):
    B, C2, HW = x_flat.shape
    Cr = caw1.shape[0]
    bspec = pl.BlockSpec((1, C2, HW), lambda b: (b, 0, 0))

    def full(shape):
        # constant block index -> weights stay resident in VMEM across steps
        return pl.BlockSpec(shape, lambda b: (0,) * len(shape))

    return pl.pallas_call(
        functools.partial(_fused_block_kernel, W=W),
        out_shape=jax.ShapeDtypeStruct((B, C2, HW), jnp.float32),
        grid=(B,),
        in_specs=[bspec, bspec, full((9, HW)),
                  full((Cr, C2)), full((Cr, 1)),
                  full((C2, Cr)), full((C2, 1)),
                  full((C2, 9 * C2)), full((C2, 9 * C2))],
        out_specs=bspec,
        compiler_params=pltpu.CompilerParams(
            dimension_semantics=("parallel",)),   # B>=2 -> both TCs on v7x
    )(x_flat, y2_flat, mask, caw1, cab1, caw2, cab2, cw1, cw2)


# --------------------------------------------------------------------------
# Kernel 4: Q = n1^T @ n2 with global L2 normalisation (grid over batch)
# --------------------------------------------------------------------------

def _q_kernel(n1_ref, n2_ref, o_ref):
    eps2 = 1e-24                               # F.normalize eps**2 (eps=1e-12)
    for g in range(n1_ref.shape[0]):
        # transpose folded into the contraction: (n1^T @ n2)
        q = lax.dot_general(n1_ref[g].astype(_MM_DTYPE),
                            n2_ref[g].astype(_MM_DTYPE),
                            dimension_numbers=(((0,), (0,)), ((), ())),
                            preferred_element_type=jnp.float32)    # (W, W)
        ssq = jnp.sum(q * q, keepdims=True)                        # (1, 1)
        o_ref[g] = q * lax.rsqrt(jnp.maximum(ssq, eps2))           # EUP rsqrt


def q_transpose_matmul_normalize(n1, n2, groups_per_block):
    G, H, W = n1.shape
    nblk = G // groups_per_block
    return pl.pallas_call(
        _q_kernel,
        out_shape=jax.ShapeDtypeStruct((G, W, W), jnp.float32),
        grid=(nblk,),
        in_specs=[pl.BlockSpec((groups_per_block, H, W), lambda b: (b, 0, 0)),
                  pl.BlockSpec((groups_per_block, H, W), lambda b: (b, 0, 0))],
        out_specs=pl.BlockSpec((groups_per_block, W, W), lambda b: (b, 0, 0)),
        compiler_params=pltpu.CompilerParams(
            dimension_semantics=("parallel",)),
    )(n1, n2)


# --------------------------------------------------------------------------
# Model (parameters + orchestration)
# --------------------------------------------------------------------------

def init_params(key, c2):
    """Deterministic synthetic init for Basic_block(in_channel=c2, ratios=1)."""
    cr = c2 // 3                                # Channle_attention default r=3
    keys = jax.random.split(key, 8)

    def unif(k, shape, fan_in):
        bound = (6.0 / fan_in) ** 0.5
        return jax.random.uniform(k, shape, jnp.float32, -bound, bound)

    return {
        "ca_w1": unif(keys[0], (cr, c2), c2),
        "ca_b1": unif(keys[1], (cr, 1), c2),
        "ca_w2": unif(keys[2], (c2, cr), max(cr, 1)),
        "ca_b2": unif(keys[3], (c2, 1), max(cr, 1)),
        "conv1_w": unif(keys[4], (c2, c2, 3, 3), c2 * 9),
        "conv2_w": unif(keys[5], (c2, c2, 3, 3), c2 * 9),
        "w1": unif(keys[6], (2, c2, c2), c2),   # kaiming_uniform-style
        "w2": unif(keys[7], (2, c2, c2), c2),
        "bn_gamma": jnp.ones((1, c2, 1, 1), jnp.float32),
        "bn_beta": jnp.zeros((1, c2, 1, 1), jnp.float32),
    }


def basic_block(x, params):
    B, C2, H, W = x.shape
    HW = H * W
    x_flat = x.reshape(B, C2, HW)

    # ---- frequency branch ----------------------------------------------
    # BatchNorm2d (PyTorch training-mode forward: batch stats, biased var)
    mean = jnp.mean(x, axis=(0, 2, 3), keepdims=True)
    var = jnp.mean((x - mean) ** 2, axis=(0, 2, 3), keepdims=True)
    xn = (x - mean) * lax.rsqrt(var + 1e-5) * params["bn_gamma"] + params["bn_beta"]

    # TODO(synk): rfft2/irfft2 have no Pallas primitive; FFTs stay in plain JAX.
    f = jnp.fft.rfft2(xn, norm="backward")                 # (B, C2, H, Wf) complex64
    Wf = f.shape[-1]
    M = B * H * Wf
    zr = jnp.transpose(jnp.real(f), (1, 0, 2, 3)).reshape(C2, M)
    zi = jnp.transpose(jnp.imag(f), (1, 0, 2, 3)).reshape(C2, M)
    zin = jnp.concatenate([zr, zi], axis=0)                # (2*C2, M) lane-dense

    w1r, w1i = params["w1"][0], params["w1"][1]            # (C2, C2)
    w2r, w2i = params["w2"][0], params["w2"][1]            # (C2, C2)
    g1 = jnp.concatenate([jnp.concatenate([w1r.T, -w1i.T], axis=1),
                          jnp.concatenate([w1i.T,  w1r.T], axis=1)], axis=0)
    g2 = jnp.concatenate([jnp.concatenate([w2r.T, -w2i.T], axis=1),
                          jnp.concatenate([w2i.T,  w2r.T], axis=1)], axis=0)

    o = freq_mlp(zin, g1, g2)                              # (2*C2, M)
    gr = o[:C2].reshape(C2, B, H, Wf)
    gi = o[C2:].reshape(C2, B, H, Wf)
    gc = lax.complex(jnp.transpose(gr, (1, 0, 2, 3)),
                     jnp.transpose(gi, (1, 0, 2, 3)))
    y2 = jnp.fft.irfft2(gc, s=(H, W), norm="backward").reshape(B, C2, HW)

    # ---- fused spatial branch + merge ------------------------------------
    mask = _conv_boundary_mask(H, W)
    cw1 = jnp.transpose(params["conv1_w"], (0, 2, 3, 1)).reshape(C2, 9 * C2)
    cw2 = jnp.transpose(params["conv2_w"], (0, 2, 3, 1)).reshape(C2, 9 * C2)
    out = fused_spatial_combine(x_flat, y2, mask,
                                params["ca_w1"], params["ca_b1"],
                                params["ca_w2"], params["ca_b2"],
                                cw1, cw2, W)
    return out.reshape(B, C2, H, W)


def matrix_q_update(u_in, z, p, params):
    """u_in, z: (B, C, H, W); p: (B, C, H, H) -> Q: (B, C, W, W)."""
    B, C, H, W = u_in.shape
    n = batched_matmul(p.reshape(B * C, H, H),
                       u_in.reshape(B * C, H, W),
                       groups_per_block=C).reshape(B, C, H, W)
    x = jnp.concatenate([n, z], axis=1)                    # (B, 2C, H, W)
    out = basic_block(x, params)
    n1 = out[:, :C]
    n2 = out[:, C:]
    Q = q_transpose_matmul_normalize(n1.reshape(B * C, H, W),
                                     n2.reshape(B * C, H, W),
                                     groups_per_block=C)
    return Q.reshape(B, C, W, W)


# --------------------------------------------------------------------------

if __name__ == "__main__":
    key = jax.random.PRNGKey(0)
    ku, kz, kp, kparams = jax.random.split(key, 4)

    B, C, H, W = 2, 4, 16, 16
    u = jax.random.normal(ku, (B, C, H, W), jnp.float32)
    z = jax.random.normal(kz, (B, C, H, W), jnp.float32)
    p = jax.random.normal(kp, (B, C, H, H), jnp.float32)

    params = init_params(kparams, 2 * C)   # Basic_block operates on 2C channels

    fwd = jax.jit(matrix_q_update)
    Q = fwd(u, z, p, params)
    jax.block_until_ready(Q)

    assert Q.shape == (B, C, W, W), Q.shape
    assert Q.dtype == jnp.float32
    assert bool(jnp.all(jnp.isfinite(Q)))
    print("KERNEL_OK")
</pallas_src>

<mosaic_0001>
module attributes {stable_mosaic.version = 11 : i64} {
  func.func @_bmm_kernel(%arg0: i32, %arg1: memref<4x16x16xf32, #tpu.memory_space<vmem>>, %arg2: memref<4x16x16xf32, #tpu.memory_space<vmem>>, %arg3: memref<4x16x16xf32, #tpu.memory_space<vmem>>) attributes {dimension_semantics = [#tpu.dimension_semantics<parallel>], iteration_bounds = array<i64: 2>, scalar_prefetch = 0 : i64, scratch_operands = 0 : i64, tpu.core_type = #tpu.core_type<tc>, window_params = [{transform_indices = @transform_0, window_bounds = array<i64: 4, 16, 16>}, {transform_indices = @transform_1, window_bounds = array<i64: 4, 16, 16>}, {transform_indices = @transform_2, window_bounds = array<i64: 4, 16, 16>}]} {
    %c0 = arith.constant 0 : index
    %c0_0 = arith.constant 0 : index
    %c0_1 = arith.constant 0 : index
    %0 = vector.load %arg1[%c0, %c0_0, %c0_1] : memref<4x16x16xf32, #tpu.memory_space<vmem>>, vector<1x16x16xf32>
    %1 = vector.shape_cast %0 : vector<1x16x16xf32> to vector<16x16xf32>
    %c0_2 = arith.constant 0 : index
    %c0_3 = arith.constant 0 : index
    %c0_4 = arith.constant 0 : index
    %2 = vector.load %arg2[%c0_2, %c0_3, %c0_4] : memref<4x16x16xf32, #tpu.memory_space<vmem>>, vector<1x16x16xf32>
    %3 = vector.shape_cast %2 : vector<1x16x16xf32> to vector<16x16xf32>
    %cst = arith.constant dense<0.000000e+00> : vector<16x16xf32>
    %4 = tpu.matmul %1, %3, %cst {dimension_numbers = #tpu.dot_dimension_numbers<[1], [0], [0], [1], [0, 0, 1, 1], [], []>} : vector<16x16xf32>, vector<16x16xf32>, vector<16x16xf32> -> vector<16x16xf32>
    %c0_5 = arith.constant 0 : index
    %c0_6 = arith.constant 0 : index
    %c0_7 = arith.constant 0 : index
    %5 = vector.load %arg3[%c0_5, %c0_6, %c0_7] : memref<4x16x16xf32, #tpu.memory_space<vmem>>, vector<1x16x16xf32>
    %6 = vector.shape_cast %5 : vector<1x16x16xf32> to vector<16x16xf32>
    %7 = vector.shape_cast %4 : vector<16x16xf32> to vector<1x16x16xf32>
    tpu.vector_store %arg3[%c0_5, %c0_6, %c0_7], %7 {strides = array<i32>} : memref<4x16x16xf32, #tpu.memory_space<vmem>>, vector<1x16x16xf32>,
    %c1 = arith.constant 1 : index
    %c0_8 = arith.constant 0 : index
    %c0_9 = arith.constant 0 : index
    %8 = vector.load %arg1[%c1, %c0_8, %c0_9] : memref<4x16x16xf32, #tpu.memory_space<vmem>>, vector<1x16x16xf32>
    %9 = vector.shape_cast %8 : vector<1x16x16xf32> to vector<16x16xf32>
    %c1_10 = arith.constant 1 : index
    %c0_11 = arith.constant 0 : index
    %c0_12 = arith.constant 0 : index
    %10 = vector.load %arg2[%c1_10, %c0_11, %c0_12] : memref<4x16x16xf32, #tpu.memory_space<vmem>>, vector<1x16x16xf32>
    %11 = vector.shape_cast %10 : vector<1x16x16xf32> to vector<16x16xf32>
    %cst_13 = arith.constant dense<0.000000e+00> : vector<16x16xf32>
    %12 = tpu.matmul %9, %11, %cst_13 {dimension_numbers = #tpu.dot_dimension_numbers<[1], [0], [0], [1], [0, 0, 1, 1], [], []>} : vector<16x16xf32>, vector<16x16xf32>, vector<16x16xf32> -> vector<16x16xf32>
    %c1_14 = arith.constant 1 : index
    %c0_15 = arith.constant 0 : index
    %c0_16 = arith.constant 0 : index
    %13 = vector.load %arg3[%c1_14, %c0_15, %c0_16] : memref<4x16x16xf32, #tpu.memory_space<vmem>>, vector<1x16x16xf32>
    %14 = vector.shape_cast %13 : vector<1x16x16xf32> to vector<16x16xf32>
    %15 = vector.shape_cast %12 : vector<16x16xf32> to vector<1x16x16xf32>
    tpu.vector_store %arg3[%c1_14, %c0_15, %c0_16], %15 {strides = array<i32>} : memref<4x16x16xf32, #tpu.memory_space<vmem>>, vector<1x16x16xf32>,
    %c2 = arith.constant 2 : index
    %c0_17 = arith.constant 0 : index
    %c0_18 = arith.constant 0 : index
    %16 = vector.load %arg1[%c2, %c0_17, %c0_18] : memref<4x16x16xf32, #tpu.memory_space<vmem>>, vector<1x16x16xf32>
    %17 = vector.shape_cast %16 : vector<1x16x16xf32> to vector<16x16xf32>
    %c2_19 = arith.constant 2 : index
    %c0_20 = arith.constant 0 : index
    %c0_21 = arith.constant 0 : index
    %18 = vector.load %arg2[%c2_19, %c0_20, %c0_21] : memref<4x16x16xf32, #tpu.memory_space<vmem>>, vector<1x16x16xf32>
    %19 = vector.shape_cast %18 : vector<1x16x16xf32> to vector<16x16xf32>
    %cst_22 = arith.constant dense<0.000000e+00> : vector<16x16xf32>
    %20 = tpu.matmul %17, %19, %cst_22 {dimension_numbers = #tpu.dot_dimension_numbers<[1], [0], [0], [1], [0, 0, 1, 1], [], []>} : vector<16x16xf32>, vector<16x16xf32>, vector<16x16xf32> -> vector<16x16xf32>
    %c2_23 = arith.constant 2 : index
    %c0_24 = arith.constant 0 : index
    %c0_25 = arith.constant 0 : index
    %21 = vector.load %arg3[%c2_23, %c0_24, %c0_25] : memref<4x16x16xf32, #tpu.memory_space<vmem>>, vector<1x16x16xf32>
    %22 = vector.shape_cast %21 : vector<1x16x16xf32> to vector<16x16xf32>
    %23 = vector.shape_cast %20 : vector<16x16xf32> to vector<1x16x16xf32>
    tpu.vector_store %arg3[%c2_23, %c0_24, %c0_25], %23 {strides = array<i32>} : memref<4x16x16xf32, #tpu.memory_space<vmem>>, vector<1x16x16xf32>,
    %c3 = arith.constant 3 : index
    %c0_26 = arith.constant 0 : index
    %c0_27 = arith.constant 0 : index
    %24 = vector.load %arg1[%c3, %c0_26, %c0_27] : memref<4x16x16xf32, #tpu.memory_space<vmem>>, vector<1x16x16xf32>
    %25 = vector.shape_cast %24 : vector<1x16x16xf32> to vector<16x16xf32>
    %c3_28 = arith.constant 3 : index
    %c0_29 = arith.constant 0 : index
    %c0_30 = arith.constant 0 : index
    %26 = vector.load %arg2[%c3_28, %c0_29, %c0_30] : memref<4x16x16xf32, #tpu.memory_space<vmem>>, vector<1x16x16xf32>
    %27 = vector.shape_cast %26 : vector<1x16x16xf32> to vector<16x16xf32>
    %cst_31 = arith.constant dense<0.000000e+00> : vector<16x16xf32>
    %28 = tpu.matmul %25, %27, %cst_31 {dimension_numbers = #tpu.dot_dimension_numbers<[1], [0], [0], [1], [0, 0, 1, 1], [], []>} : vector<16x16xf32>, vector<16x16xf32>, vector<16x16xf32> -> vector<16x16xf32>
    %c3_32 = arith.constant 3 : index
    %c0_33 = arith.constant 0 : index
    %c0_34 = arith.constant 0 : index
    %29 = vector.load %arg3[%c3_32, %c0_33, %c0_34] : memref<4x16x16xf32, #tpu.memory_space<vmem>>, vector<1x16x16xf32>
    %30 = vector.shape_cast %29 : vector<1x16x16xf32> to vector<16x16xf32>
    %31 = vector.shape_cast %28 : vector<16x16xf32> to vector<1x16x16xf32>
    tpu.vector_store %arg3[%c3_32, %c0_33, %c0_34], %31 {strides = array<i32>} : memref<4x16x16xf32, #tpu.memory_space<vmem>>, vector<1x16x16xf32>,
    return
  }
  func.func @transform_0(%arg0: i32) -> (i32, i32, i32) {
    %c0_i32 = arith.constant 0 : i32
    %c0_i32_0 = arith.constant 0 : i32
    %c0_i32_1 = arith.constant 0 : i32
    return %arg0, %c0_i32, %c0_i32_0 : i32, i32, i32
  }
  func.func @transform_1(%arg0: i32) -> (i32, i32, i32) {
    %c0_i32 = arith.constant 0 : i32
    %c0_i32_0 = arith.constant 0 : i32
    %c0_i32_1 = arith.constant 0 : i32
    return %arg0, %c0_i32, %c0_i32_0 : i32, i32, i32
  }
  func.func @transform_2(%arg0: i32) -> (i32, i32, i32) {
    %c0_i32 = arith.constant 0 : i32
    %c0_i32_0 = arith.constant 0 : i32
    %c0_i32_1 = arith.constant 0 : i32
    return %arg0, %c0_i32, %c0_i32_0 : i32, i32, i32
  }
}

module attributes {stable_mosaic.version = 11 : i64} {
  func.func @_freq_kernel(%arg0: memref<16x288xf32, #tpu.memory_space<vmem>>, %arg1: memref<16x16xf32, #tpu.memory_space<vmem>>, %arg2: memref<16x16xf32, #tpu.memory_space<vmem>>, %arg3: memref<16x288xf32, #tpu.memory_space<vmem>>) attributes {dimension_semantics = [], scalar_prefetch = 0 : i64, scratch_operands = 0 : i64, tpu.core_type = #tpu.core_type<tc>} {
    %c0 = arith.constant 0 : index
    %c0_0 = arith.constant 0 : index
    %0 = vector.load %arg1[%c0, %c0_0] : memref<16x16xf32, #tpu.memory_space<vmem>>, vector<16x16xf32>
    %c0_1 = arith.constant 0 : index
    %c0_2 = arith.constant 0 : index
    %1 = vector.load %arg0[%c0_1, %c0_2] : memref<16x288xf32, #tpu.memory_space<vmem>>, vector<16x288xf32>
    %cst = arith.constant dense<0.000000e+00> : vector<16x288xf32>
    %2 = tpu.matmul %0, %1, %cst {dimension_numbers = #tpu.dot_dimension_numbers<[1], [0], [0], [1], [0, 0, 1, 1], [], []>} : vector<16x16xf32>, vector<16x288xf32>, vector<16x288xf32> -> vector<16x288xf32>
    %cst_3 = arith.constant 0.000000e+00 : f32
    %3 = vector.broadcast %cst_3 : f32 to vector<16x288xf32>
    %4 = arith.maximumf %2, %3 : vector<16x288xf32>
    %c0_4 = arith.constant 0 : index
    %c0_5 = arith.constant 0 : index
    %5 = vector.load %arg2[%c0_4, %c0_5] : memref<16x16xf32, #tpu.memory_space<vmem>>, vector<16x16xf32>
    %cst_6 = arith.constant dense<0.000000e+00> : vector<16x288xf32>
    %6 = tpu.matmul %5, %4, %cst_6 {dimension_numbers = #tpu.dot_dimension_numbers<[1], [0], [0], [1], [0, 0, 1, 1], [], []>} : vector<16x16xf32>, vector<16x288xf32>, vector<16x288xf32> -> vector<16x288xf32>
    %c0_7 = arith.constant 0 : index
    %c0_8 = arith.constant 0 : index
    %7 = vector.load %arg3[%c0_7, %c0_8] : memref<16x288xf32, #tpu.memory_space<vmem>>, vector<16x288xf32>
    tpu.vector_store %arg3[%c0_7, %c0_8], %6 {strides = array<i32>} : memref<16x288xf32, #tpu.memory_space<vmem>>, vector<16x288xf32>,
    return
  }
}

module attributes {stable_mosaic.version = 11 : i64} {
  func.func @_q_kernel(%arg0: i32, %arg1: memref<4x16x16xf32, #tpu.memory_space<vmem>>, %arg2: memref<4x16x16xf32, #tpu.memory_space<vmem>>, %arg3: memref<4x16x16xf32, #tpu.memory_space<vmem>>) attributes {dimension_semantics = [#tpu.dimension_semantics<parallel>], iteration_bounds = array<i64: 2>, scalar_prefetch = 0 : i64, scratch_operands = 0 : i64, tpu.core_type = #tpu.core_type<tc>, window_params = [{transform_indices = @transform_0, window_bounds = array<i64: 4, 16, 16>}, {transform_indices = @transform_1, window_bounds = array<i64: 4, 16, 16>}, {transform_indices = @transform_2, window_bounds = array<i64: 4, 16, 16>}]} {
    %c0 = arith.constant 0 : index
    %c0_0 = arith.constant 0 : index
    %c0_1 = arith.constant 0 : index
    %0 = vector.load %arg1[%c0, %c0_0, %c0_1] : memref<4x16x16xf32, #tpu.memory_space<vmem>>, vector<1x16x16xf32>
    %1 = vector.shape_cast %0 : vector<1x16x16xf32> to vector<16x16xf32>
    %c0_2 = arith.constant 0 : index
    %c0_3 = arith.constant 0 : index
    %c0_4 = arith.constant 0 : index
    %2 = vector.load %arg2[%c0_2, %c0_3, %c0_4] : memref<4x16x16xf32, #tpu.memory_space<vmem>>, vector<1x16x16xf32>
    %3 = vector.shape_cast %2 : vector<1x16x16xf32> to vector<16x16xf32>
    %cst = arith.constant dense<0.000000e+00> : vector<16x16xf32>
    %4 = tpu.matmul %1, %3, %cst {dimension_numbers = #tpu.dot_dimension_numbers<[0], [0], [1], [1], [0, 1, 1, 1], [], []>} : vector<16x16xf32>, vector<16x16xf32>, vector<16x16xf32> -> vector<16x16xf32>
    %5 = arith.mulf %4, %4 : vector<16x16xf32>
    %6 = vector.shape_cast %5 : vector<16x16xf32> to vector<1x16x16xf32>
    %cst_5 = arith.constant dense<0.000000e+00> : vector<1xf32>
    %7 = vector.multi_reduction <add>, %6, %cst_5 [1, 2] : vector<1x16x16xf32> to vector<1xf32>
    %8 = vector.shape_cast %7 : vector<1xf32> to vector<1x1x1xf32>
    %9 = vector.extract %8[0, 0, 0] : f32 from vector<1x1x1xf32>
    %10 = vector.broadcast %9 : f32 to vector<1x1xf32>
    %cst_6 = arith.constant 1.000000e-24 : f32
    %11 = vector.broadcast %cst_6 : f32 to vector<1x1xf32>
    %12 = arith.maximumf %10, %11 : vector<1x1xf32>
    %13 = math.rsqrt %12 : vector<1x1xf32>
    %14 = vector.broadcast %13 : vector<1x1xf32> to vector<16x16xf32>
    %15 = arith.mulf %4, %14 : vector<16x16xf32>
    %c0_7 = arith.constant 0 : index
    %c0_8 = arith.constant 0 : index
    %c0_9 = arith.constant 0 : index
    %16 = vector.load %arg3[%c0_7, %c0_8, %c0_9] : memref<4x16x16xf32, #tpu.memory_space<vmem>>, vector<1x16x16xf32>
    %17 = vector.shape_cast %16 : vector<1x16x16xf32> to vector<16x16xf32>
    %18 = vector.shape_cast %15 : vector<16x16xf32> to vector<1x16x16xf32>
    tpu.vector_store %arg3[%c0_7, %c0_8, %c0_9], %18 {strides = array<i32>} : memref<4x16x16xf32, #tpu.memory_space<vmem>>, vector<1x16x16xf32>,
    %c1 = arith.constant 1 : index
    %c0_10 = arith.constant 0 : index
    %c0_11 = arith.constant 0 : index
    %19 = vector.load %arg1[%c1, %c0_10, %c0_11] : memref<4x16x16xf32, #tpu.memory_space<vmem>>, vector<1x16x16xf32>
    %20 = vector.shape_cast %19 : vector<1x16x16xf32> to vector<16x16xf32>
    %c1_12 = arith.constant 1 : index
    %c0_13 = arith.constant 0 : index
    %c0_14 = arith.constant 0 : index
    %21 = vector.load %arg2[%c1_12, %c0_13, %c0_14] : memref<4x16x16xf32, #tpu.memory_space<vmem>>, vector<1x16x16xf32>
    %22 = vector.shape_cast %21 : vector<1x16x16xf32> to vector<16x16xf32>
    %cst_15 = arith.constant dense<0.000000e+00> : vector<16x16xf32>
    %23 = tpu.matmul %20, %22, %cst_15 {dimension_numbers = #tpu.dot_dimension_numbers<[0], [0], [1], [1], [0, 1, 1, 1], [], []>} : vector<16x16xf32>, vector<16x16xf32>, vector<16x16xf32> -> vector<16x16xf32>
    %24 = arith.mulf %23, %23 : vector<16x16xf32>
    %25 = vector.shape_cast %24 : vector<16x16xf32> to vector<1x16x16xf32>
    %cst_16 = arith.constant dense<0.000000e+00> : vector<1xf32>
    %26 = vector.multi_reduction <add>, %25, %cst_16 [1, 2] : vector<1x16x16xf32> to vector<1xf32>
    %27 = vector.shape_cast %26 : vector<1xf32> to vector<1x1x1xf32>
    %28 = vector.extract %27[0, 0, 0] : f32 from vector<1x1x1xf32>
    %29 = vector.broadcast %28 : f32 to vector<1x1xf32>
    %cst_17 = arith.constant 1.000000e-24 : f32
    %30 = vector.broadcast %cst_17 : f32 to vector<1x1xf32>
    %31 = arith.maximumf %29, %30 : vector<1x1xf32>
    %32 = math.rsqrt %31 : vector<1x1xf32>
    %33 = vector.broadcast %32 : vector<1x1xf32> to vector<16x16xf32>
    %34 = arith.mulf %23, %33 : vector<16x16xf32>
    %c1_18 = arith.constant 1 : index
    %c0_19 = arith.constant 0 : index
    %c0_20 = arith.constant 0 : index
    %35 = vector.load %arg3[%c1_18, %c0_19, %c0_20] : memref<4x16x16xf32, #tpu.memory_space<vmem>>, vector<1x16x16xf32>
    %36 = vector.shape_cast %35 : vector<1x16x16xf32> to vector<16x16xf32>
    %37 = vector.shape_cast %34 : vector<16x16xf32> to vector<1x16x16xf32>
    tpu.vector_store %arg3[%c1_18, %c0_19, %c0_20], %37 {strides = array<i32>} : memref<4x16x16xf32, #tpu.memory_space<vmem>>, vector<1x16x16xf32>,
    %c2 = arith.constant 2 : index
    %c0_21 = arith.constant 0 : index
    %c0_22 = arith.constant 0 : index
    %38 = vector.load %arg1[%c2, %c0_21, %c0_22] : memref<4x16x16xf32, #tpu.memory_space<vmem>>, vector<1x16x16xf32>
    %39 = vector.shape_cast %38 : vector<1x16x16xf32> to vector<16x16xf32>
    %c2_23 = arith.constant 2 : index
    %c0_24 = arith.constant 0 : index
    %c0_25 = arith.constant 0 : index
    %40 = vector.load %arg2[%c2_23, %c0_24, %c0_25] : memref<4x16x16xf32, #tpu.memory_space<vmem>>, vector<1x16x16xf32>
    %41 = vector.shape_cast %40 : vector<1x16x16xf32> to vector<16x16xf32>
    %cst_26 = arith.constant dense<0.000000e+00> : vector<16x16xf32>
    %42 = tpu.matmul %39, %41, %cst_26 {dimension_numbers = #tpu.dot_dimension_numbers<[0], [0], [1], [1], [0, 1, 1, 1], [], []>} : vector<16x16xf32>, vector<16x16xf32>, vector<16x16xf32> -> vector<16x16xf32>
    %43 = arith.mulf %42, %42 : vector<16x16xf32>
    %44 = vector.shape_cast %43 : vector<16x16xf32> to vector<1x16x16xf32>
    %cst_27 = arith.constant dense<0.000000e+00> : vector<1xf32>
    %45 = vector.multi_reduction <add>, %44, %cst_27 [1, 2] : vector<1x16x16xf32> to vector<1xf32>
    %46 = vector.shape_cast %45 : vector<1xf32> to vector<1x1x1xf32>
    %47 = vector.extract %46[0, 0, 0] : f32 from vector<1x1x1xf32>
    %48 = vector.broadcast %47 : f32 to vector<1x1xf32>
    %cst_28 = arith.constant 1.000000e-24 : f32
    %49 = vector.broadcast %cst_28 : f32 to vector<1x1xf32>
    %50 = arith.maximumf %48, %49 : vector<1x1xf32>
    %51 = math.rsqrt %50 : vector<1x1xf32>
    %52 = vector.broadcast %51 : vector<1x1xf32> to vector<16x16xf32>
    %53 = arith.mulf %42, %52 : vector<16x16xf32>
    %c2_29 = arith.constant 2 : index
    %c0_30 = arith.constant 0 : index
    %c0_31 = arith.constant 0 : index
    %54 = vector.load %arg3[%c2_29, %c0_30, %c0_31] : memref<4x16x16xf32, #tpu.memory_space<vmem>>, vector<1x16x16xf32>
    %55 = vector.shape_cast %54 : vector<1x16x16xf32> to vector<16x16xf32>
    %56 = vector.shape_cast %53 : vector<16x16xf32> to vector<1x16x16xf32>
    tpu.vector_store %arg3[%c2_29, %c0_30, %c0_31], %56 {strides = array<i32>} : memref<4x16x16xf32, #tpu.memory_space<vmem>>, vector<1x16x16xf32>,
    %c3 = arith.constant 3 : index
    %c0_32 = arith.constant 0 : index
    %c0_33 = arith.constant 0 : index
    %57 = vector.load %arg1[%c3, %c0_32, %c0_33] : memref<4x16x16xf32, #tpu.memory_space<vmem>>, vector<1x16x16xf32>
    %58 = vector.shape_cast %57 : vector<1x16x16xf32> to vector<16x16xf32>
    %c3_34 = arith.constant 3 : index
    %c0_35 = arith.constant 0 : index
    %c0_36 = arith.constant 0 : index
    %59 = vector.load %arg2[%c3_34, %c0_35, %c0_36] : memref<4x16x16xf32, #tpu.memory_space<vmem>>, vector<1x16x16xf32>
    %60 = vector.shape_cast %59 : vector<1x16x16xf32> to vector<16x16xf32>
    %cst_37 = arith.constant dense<0.000000e+00> : vector<16x16xf32>
    %61 = tpu.matmul %58, %60, %cst_37 {dimension_numbers = #tpu.dot_dimension_numbers<[0], [0], [1], [1], [0, 1, 1, 1], [], []>} : vector<16x16xf32>, vector<16x16xf32>, vector<16x16xf32> -> vector<16x16xf32>
    %62 = arith.mulf %61, %61 : vector<16x16xf32>
    %63 = vector.shape_cast %62 : vector<16x16xf32> to vector<1x16x16xf32>
    %cst_38 = arith.constant dense<0.000000e+00> : vector<1xf32>
    %64 = vector.multi_reduction <add>, %63, %cst_38 [1, 2] : vector<1x16x16xf32> to vector<1xf32>
    %65 = vector.shape_cast %64 : vector<1xf32> to vector<1x1x1xf32>
    %66 = vector.extract %65[0, 0, 0] : f32 from vector<1x1x1xf32>
    %67 = vector.broadcast %66 : f32 to vector<1x1xf32>
    %cst_39 = arith.constant 1.000000e-24 : f32
    %68 = vector.broadcast %cst_39 : f32 to vector<1x1xf32>
    %69 = arith.maximumf %67, %68 : vector<1x1xf32>
    %70 = math.rsqrt %69 : vector<1x1xf32>
    %71 = vector.broadcast %70 : vector<1x1xf32> to vector<16x16xf32>
    %72 = arith.mulf %61, %71 : vector<16x16xf32>
    %c3_40 = arith.constant 3 : index
    %c0_41 = arith.constant 0 : index
    %c0_42 = arith.constant 0 : index
    %73 = vector.load %arg3[%c3_40, %c0_41, %c0_42] : memref<4x16x16xf32, #tpu.memory_space<vmem>>, vector<1x16x16xf32>
    %74 = vector.shape_cast %73 : vector<1x16x16xf32> to vector<16x16xf32>
    %75 = vector.shape_cast %72 : vector<16x16xf32> to vector<1x16x16xf32>
    tpu.vector_store %arg3[%c3_40, %c0_41, %c0_42], %75 {strides = array<i32>} : memref<4x16x16xf32, #tpu.memory_space<vmem>>, vector<1x16x16xf32>,
    return
  }
  func.func @transform_0(%arg0: i32) -> (i32, i32, i32) {
    %c0_i32 = arith.constant 0 : i32
    %c0_i32_0 = arith.constant 0 : i32
    %c0_i32_1 = arith.constant 0 : i32
    return %arg0, %c0_i32, %c0_i32_0 : i32, i32, i32
  }
  func.func @transform_1(%arg0: i32) -> (i32, i32, i32) {
    %c0_i32 = arith.constant 0 : i32
    %c0_i32_0 = arith.constant 0 : i32
    %c0_i32_1 = arith.constant 0 : i32
    return %arg0, %c0_i32, %c0_i32_0 : i32, i32, i32
  }
  func.func @transform_2(%arg0: i32) -> (i32, i32, i32) {
    %c0_i32 = arith.constant 0 : i32
    %c0_i32_0 = arith.constant 0 : i32
    %c0_i32_1 = arith.constant 0 : i32
    return %arg0, %c0_i32, %c0_i32_0 : i32, i32, i32
  }
}

module attributes {stable_mosaic.version = 11 : i64} {
  func.func @_fused_block_kernel(%arg0: i32, %arg1: memref<1x8x256xf32, #tpu.memory_space<vmem>>, %arg2: memref<1x8x256xf32, #tpu.memory_space<vmem>>, %arg3: memref<9x256xf32, #tpu.memory_space<vmem>>, %arg4: memref<2x8xf32, #tpu.memory_space<vmem>>, %arg5: memref<2x1xf32, #tpu.memory_space<vmem>>, %arg6: memref<8x2xf32, #tpu.memory_space<vmem>>, %arg7: memref<8x1xf32, #tpu.memory_space<vmem>>, %arg8: memref<8x72xf32, #tpu.memory_space<vmem>>, %arg9: memref<8x72xf32, #tpu.memory_space<vmem>>, %arg10: memref<1x8x256xf32, #tpu.memory_space<vmem>>) attributes {dimension_semantics = [#tpu.dimension_semantics<parallel>], iteration_bounds = array<i64: 2>, scalar_prefetch = 0 : i64, scratch_operands = 0 : i64, tpu.core_type = #tpu.core_type<tc>, window_params = [{transform_indices = @transform_0, window_bounds = array<i64: 1, 8, 256>}, {transform_indices = @transform_1, window_bounds = array<i64: 1, 8, 256>}, {pipeline_mode = #tpu.pipeline_mode<synchronous>, transform_indices = @transform_2, window_bounds = array<i64: 9, 256>}, {pipeline_mode = #tpu.pipeline_mode<synchronous>, transform_indices = @transform_3, window_bounds = array<i64: 2, 8>}, {pipeline_mode = #tpu.pipeline_mode<synchronous>, transform_indices = @transform_4, window_bounds = array<i64: 2, 1>}, {pipeline_mode = #tpu.pipeline_mode<synchronous>, transform_indices = @transform_5, window_bounds = array<i64: 8, 2>}, {pipeline_mode = #tpu.pipeline_mode<synchronous>, transform_indices = @transform_6, window_bounds = array<i64: 8, 1>}, {pipeline_mode = #tpu.pipeline_mode<synchronous>, transform_indices = @transform_7, window_bounds = array<i64: 8, 72>}, {pipeline_mode = #tpu.pipeline_mode<synchronous>, transform_indices = @transform_8, window_bounds = array<i64: 8, 72>}, {transform_indices = @transform_9, window_bounds = array<i64: 1, 8, 256>}]} {
    %c0 = arith.constant 0 : index
    %c0_0 = arith.constant 0 : index
    %c0_1 = arith.constant 0 : index
    %0 = vector.load %arg1[%c0, %c0_0, %c0_1] : memref<1x8x256xf32, #tpu.memory_space<vmem>>, vector<1x8x256xf32>
    %1 = vector.shape_cast %0 : vector<1x8x256xf32> to vector<8x256xf32>
    %c0_2 = arith.constant 0 : index
    %c0_3 = arith.constant 0 : index
    %c0_4 = arith.constant 0 : index
    %2 = vector.load %arg2[%c0_2, %c0_3, %c0_4] : memref<1x8x256xf32, #tpu.memory_space<vmem>>, vector<1x8x256xf32>
    %3 = vector.shape_cast %2 : vector<1x8x256xf32> to vector<8x256xf32>
    %c0_5 = arith.constant 0 : index
    %c0_6 = arith.constant 0 : index
    %4 = vector.load %arg3[%c0_5, %c0_6] : memref<9x256xf32, #tpu.memory_space<vmem>>, vector<9x256xf32>
    %cst = arith.constant dense<0.000000e+00> : vector<8xf32>
    %5 = vector.multi_reduction <add>, %1, %cst [1] : vector<8x256xf32> to vector<8xf32>
    %6 = vector.shape_cast %5 : vector<8xf32> to vector<8x1xf32>
    %cst_7 = arith.constant 2.560000e+02 : f32
    %7 = vector.broadcast %cst_7 : f32 to vector<8x1xf32>
    %8 = arith.divf %6, %7 : vector<8x1xf32>
    %9 = vector.shape_cast %8 : vector<8x1xf32> to vector<8x1xf32>
    %10 = vector.broadcast %9 : vector<8x1xf32> to vector<8x256xf32>
    %c0_8 = arith.constant 0 : index
    %c0_9 = arith.constant 0 : index
    %11 = vector.load %arg4[%c0_8, %c0_9] : memref<2x8xf32, #tpu.memory_space<vmem>>, vector<2x8xf32>
    %cst_10 = arith.constant dense<0.000000e+00> : vector<2x256xf32>
    %12 = tpu.matmul %11, %10, %cst_10 {dimension_numbers = #tpu.dot_dimension_numbers<[1], [0], [0], [1], [0, 0, 1, 1], [], []>} : vector<2x8xf32>, vector<8x256xf32>, vector<2x256xf32> -> vector<2x256xf32>
    %c0_11 = arith.constant 0 : index
    %c0_12 = arith.constant 0 : index
    %13 = vector.load %arg5[%c0_11, %c0_12] : memref<2x1xf32, #tpu.memory_space<vmem>>, vector<2x1xf32>
    %14 = vector.broadcast %13 : vector<2x1xf32> to vector<2x256xf32>
    %15 = arith.addf %12, %14 : vector<2x256xf32>
    %cst_13 = arith.constant 0.000000e+00 : f32
    %16 = vector.broadcast %cst_13 : f32 to vector<2x256xf32>
    %17 = arith.maximumf %15, %16 : vector<2x256xf32>
    %c0_14 = arith.constant 0 : index
    %c0_15 = arith.constant 0 : index
    %18 = vector.load %arg6[%c0_14, %c0_15] : memref<8x2xf32, #tpu.memory_space<vmem>>, vector<8x2xf32>
    %cst_16 = arith.constant dense<0.000000e+00> : vector<8x256xf32>
    %19 = tpu.matmul %18, %17, %cst_16 {dimension_numbers = #tpu.dot_dimension_numbers<[1], [0], [0], [1], [0, 0, 1, 1], [], []>} : vector<8x2xf32>, vector<2x256xf32>, vector<8x256xf32> -> vector<8x256xf32>
    %c0_17 = arith.constant 0 : index
    %c0_18 = arith.constant 0 : index
    %20 = vector.load %arg7[%c0_17, %c0_18] : memref<8x1xf32, #tpu.memory_space<vmem>>, vector<8x1xf32>
    %21 = vector.broadcast %20 : vector<8x1xf32> to vector<8x256xf32>
    %22 = arith.addf %19, %21 : vector<8x256xf32>
    %23 = arith.negf %22 : vector<8x256xf32>
    %24 = math.exp %23 : vector<8x256xf32>
    %cst_19 = arith.constant 1.000000e+00 : f32
    %25 = vector.broadcast %cst_19 : f32 to vector<8x256xf32>
    %26 = arith.addf %25, %24 : vector<8x256xf32>
    %27 = arith.divf %25, %26 : vector<8x256xf32>
    %28 = arith.mulf %1, %27 : vector<8x256xf32>
    %c0_20 = arith.constant 0 : index
    %c0_21 = arith.constant 0 : index
    %29 = vector.load %arg8[%c0_20, %c0_21] : memref<8x72xf32, #tpu.memory_space<vmem>>, vector<8x72xf32>
    %30 = vector.extract_strided_slice %28 {offsets = [0, 239], sizes = [8, 17], strides = [1, 1]} : vector<8x256xf32> to vector<8x17xf32>
    %31 = vector.extract_strided_slice %28 {offsets = [0, 0], sizes = [8, 239], strides = [1, 1]} : vector<8x256xf32> to vector<8x239xf32>
    %32 = tpu.concatenate %30, %31 in 1 : vector<8x17xf32>, vector<8x239xf32> -> vector<8x256xf32>
    %33 = vector.extract_strided_slice %4 {offsets = [0, 0], sizes = [1, 256], strides = [1, 1]} : vector<9x256xf32> to vector<1x256xf32>
    %34 = vector.broadcast %33 : vector<1x256xf32> to vector<8x256xf32>
    %35 = arith.mulf %32, %34 : vector<8x256xf32>
    %36 = vector.extract_strided_slice %28 {offsets = [0, 240], sizes = [8, 16], strides = [1, 1]} : vector<8x256xf32> to vector<8x16xf32>
    %37 = vector.extract_strided_slice %28 {offsets = [0, 0], sizes = [8, 240], strides = [1, 1]} : vector<8x256xf32> to vector<8x240xf32>
    %38 = tpu.concatenate %36, %37 in 1 : vector<8x16xf32>, vector<8x240xf32> -> vector<8x256xf32>
    %39 = vector.extract_strided_slice %4 {offsets = [1, 0], sizes = [1, 256], strides = [1, 1]} : vector<9x256xf32> to vector<1x256xf32>
    %40 = vector.broadcast %39 : vector<1x256xf32> to vector<8x256xf32>
    %41 = arith.mulf %38, %40 : vector<8x256xf32>
    %42 = vector.extract_strided_slice %28 {offsets = [0, 241], sizes = [8, 15], strides = [1, 1]} : vector<8x256xf32> to vector<8x15xf32>
    %43 = vector.extract_strided_slice %28 {offsets = [0, 0], sizes = [8, 241], strides = [1, 1]} : vector<8x256xf32> to vector<8x241xf32>
    %44 = tpu.concatenate %42, %43 in 1 : vector<8x15xf32>, vector<8x241xf32> -> vector<8x256xf32>
    %45 = vector.extract_strided_slice %4 {offsets = [2, 0], sizes = [1, 256], strides = [1, 1]} : vector<9x256xf32> to vector<1x256xf32>
    %46 = vector.broadcast %45 : vector<1x256xf32> to vector<8x256xf32>
    %47 = arith.mulf %44, %46 : vector<8x256xf32>
    %48 = vector.extract_strided_slice %28 {offsets = [0, 255], sizes = [8, 1], strides = [1, 1]} : vector<8x256xf32> to vector<8x1xf32>
    %49 = vector.extract_strided_slice %28 {offsets = [0, 0], sizes = [8, 255], strides = [1, 1]} : vector<8x256xf32> to vector<8x255xf32>
    %50 = tpu.concatenate %48, %49 in 1 : vector<8x1xf32>, vector<8x255xf32> -> vector<8x256xf32>
    %51 = vector.extract_strided_slice %4 {offsets = [3, 0], sizes = [1, 256], strides = [1, 1]} : vector<9x256xf32> to vector<1x256xf32>
    %52 = vector.broadcast %51 : vector<1x256xf32> to vector<8x256xf32>
    %53 = arith.mulf %50, %52 : vector<8x256xf32>
    %54 = vector.extract_strided_slice %4 {offsets = [4, 0], sizes = [1, 256], strides = [1, 1]} : vector<9x256xf32> to vector<1x256xf32>
    %55 = vector.broadcast %54 : vector<1x256xf32> to vector<8x256xf32>
    %56 = arith.mulf %28, %55 : vector<8x256xf32>
    %57 = vector.extract_strided_slice %28 {offsets = [0, 1], sizes = [8, 255], strides = [1, 1]} : vector<8x256xf32> to vector<8x255xf32>
    %58 = vector.extract_strided_slice %28 {offsets = [0, 0], sizes = [8, 1], strides = [1, 1]} : vector<8x256xf32> to vector<8x1xf32>
    %59 = tpu.concatenate %57, %58 in 1 : vector<8x255xf32>, vector<8x1xf32> -> vector<8x256xf32>
    %60 = vector.extract_strided_slice %4 {offsets = [5, 0], sizes = [1, 256], strides = [1, 1]} : vector<9x256xf32> to vector<1x256xf32>
    %61 = vector.broadcast %60 : vector<1x256xf32> to vector<8x256xf32>
    %62 = arith.mulf %59, %61 : vector<8x256xf32>
    %63 = vector.extract_strided_slice %28 {offsets = [0, 15], sizes = [8, 241], strides = [1, 1]} : vector<8x256xf32> to vector<8x241xf32>
    %64 = vector.extract_strided_slice %28 {offsets = [0, 0], sizes = [8, 15], strides = [1, 1]} : vector<8x256xf32> to vector<8x15xf32>
    %65 = tpu.concatenate %63, %64 in 1 : vector<8x241xf32>, vector<8x15xf32> -> vector<8x256xf32>
    %66 = vector.extract_strided_slice %4 {offsets = [6, 0], sizes = [1, 256], strides = [1, 1]} : vector<9x256xf32> to vector<1x256xf32>
    %67 = vector.broadcast %66 : vector<1x256xf32> to vector<8x256xf32>
    %68 = arith.mulf %65, %67 : vector<8x256xf32>
    %69 = vector.extract_strided_slice %28 {offsets = [0, 16], sizes = [8, 240], strides = [1, 1]} : vector<8x256xf32> to vector<8x240xf32>
    %70 = vector.extract_strided_slice %28 {offsets = [0, 0], sizes = [8, 16], strides = [1, 1]} : vector<8x256xf32> to vector<8x16xf32>
    %71 = tpu.concatenate %69, %70 in 1 : vector<8x240xf32>, vector<8x16xf32> -> vector<8x256xf32>
    %72 = vector.extract_strided_slice %4 {offsets = [7, 0], sizes = [1, 256], strides = [1, 1]} : vector<9x256xf32> to vector<1x256xf32>
    %73 = vector.broadcast %72 : vector<1x256xf32> to vector<8x256xf32>
    %74 = arith.mulf %71, %73 : vector<8x256xf32>
    %75 = vector.extract_strided_slice %28 {offsets = [0, 17], sizes = [8, 239], strides = [1, 1]} : vector<8x256xf32> to vector<8x239xf32>
    %76 = vector.extract_strided_slice %28 {offsets = [0, 0], sizes = [8, 17], strides = [1, 1]} : vector<8x256xf32> to vector<8x17xf32>
    %77 = tpu.concatenate %75, %76 in 1 : vector<8x239xf32>, vector<8x17xf32> -> vector<8x256xf32>
    %78 = vector.extract_strided_slice %4 {offsets = [8, 0], sizes = [1, 256], strides = [1, 1]} : vector<9x256xf32> to vector<1x256xf32>
    %79 = vector.broadcast %78 : vector<1x256xf32> to vector<8x256xf32>
    %80 = arith.mulf %77, %79 : vector<8x256xf32>
    %81 = tpu.concatenate %35, %41, %47, %53, %56, %62, %68, %74, %80 in 0 : vector<8x256xf32>, vector<8x256xf32>, vector<8x256xf32>, vector<8x256xf32>, vector<8x256xf32>, vector<8x256xf32>, vector<8x256xf32>, vector<8x256xf32>, vector<8x256xf32> -> vector<72x256xf32>
    %cst_22 = arith.constant dense<0.000000e+00> : vector<8x256xf32>
    %82 = tpu.matmul %29, %81, %cst_22 {dimension_numbers = #tpu.dot_dimension_numbers<[1], [0], [0], [1], [0, 0, 1, 1], [], []>} : vector<8x72xf32>, vector<72x256xf32>, vector<8x256xf32> -> vector<8x256xf32>
    %cst_23 = arith.constant 0.000000e+00 : f32
    %83 = vector.broadcast %cst_23 : f32 to vector<8x256xf32>
    %84 = arith.maximumf %82, %83 : vector<8x256xf32>
    %c0_24 = arith.constant 0 : index
    %c0_25 = arith.constant 0 : index
    %85 = vector.load %arg9[%c0_24, %c0_25] : memref<8x72xf32, #tpu.memory_space<vmem>>, vector<8x72xf32>
    %86 = vector.extract_strided_slice %84 {offsets = [0, 239], sizes = [8, 17], strides = [1, 1]} : vector<8x256xf32> to vector<8x17xf32>
    %87 = vector.extract_strided_slice %84 {offsets = [0, 0], sizes = [8, 239], strides = [1, 1]} : vector<8x256xf32> to vector<8x239xf32>
    %88 = tpu.concatenate %86, %87 in 1 : vector<8x17xf32>, vector<8x239xf32> -> vector<8x256xf32>
    %89 = vector.extract_strided_slice %4 {offsets = [0, 0], sizes = [1, 256], strides = [1, 1]} : vector<9x256xf32> to vector<1x256xf32>
    %90 = vector.broadcast %89 : vector<1x256xf32> to vector<8x256xf32>
    %91 = arith.mulf %88, %90 : vector<8x256xf32>
    %92 = vector.extract_strided_slice %84 {offsets = [0, 240], sizes = [8, 16], strides = [1, 1]} : vector<8x256xf32> to vector<8x16xf32>
    %93 = vector.extract_strided_slice %84 {offsets = [0, 0], sizes = [8, 240], strides = [1, 1]} : vector<8x256xf32> to vector<8x240xf32>
    %94 = tpu.concatenate %92, %93 in 1 : vector<8x16xf32>, vector<8x240xf32> -> vector<8x256xf32>
    %95 = vector.extract_strided_slice %4 {offsets = [1, 0], sizes = [1, 256], strides = [1, 1]} : vector<9x256xf32> to vector<1x256xf32>
    %96 = vector.broadcast %95 : vector<1x256xf32> to vector<8x256xf32>
    %97 = arith.mulf %94, %96 : vector<8x256xf32>
    %98 = vector.extract_strided_slice %84 {offsets = [0, 241], sizes = [8, 15], strides = [1, 1]} : vector<8x256xf32> to vector<8x15xf32>
    %99 = vector.extract_strided_slice %84 {offsets = [0, 0], sizes = [8, 241], strides = [1, 1]} : vector<8x256xf32> to vector<8x241xf32>
    %100 = tpu.concatenate %98, %99 in 1 : vector<8x15xf32>, vector<8x241xf32> -> vector<8x256xf32>
    %101 = vector.extract_strided_slice %4 {offsets = [2, 0], sizes = [1, 256], strides = [1, 1]} : vector<9x256xf32> to vector<1x256xf32>
    %102 = vector.broadcast %101 : vector<1x256xf32> to vector<8x256xf32>
    %103 = arith.mulf %100, %102 : vector<8x256xf32>
    %104 = vector.extract_strided_slice %84 {offsets = [0, 255], sizes = [8, 1], strides = [1, 1]} : vector<8x256xf32> to vector<8x1xf32>
    %105 = vector.extract_strided_slice %84 {offsets = [0, 0], sizes = [8, 255], strides = [1, 1]} : vector<8x256xf32> to vector<8x255xf32>
    %106 = tpu.concatenate %104, %105 in 1 : vector<8x1xf32>, vector<8x255xf32> -> vector<8x256xf32>
    %107 = vector.extract_strided_slice %4 {offsets = [3, 0], sizes = [1, 256], strides = [1, 1]} : vector<9x256xf32> to vector<1x256xf32>
    %108 = vector.broadcast %107 : vector<1x256xf32> to vector<8x256xf32>
    %109 = arith.mulf %106, %108 : vector<8x256xf32>
    %110 = vector.extract_strided_slice %4 {offsets = [4, 0], sizes = [1, 256], strides = [1, 1]} : vector<9x256xf32> to vector<1x256xf32>
    %111 = vector.broadcast %110 : vector<1x256xf32> to vector<8x256xf32>
    %112 = arith.mulf %84, %111 : vector<8x256xf32>
    %113 = vector.extract_strided_slice %84 {offsets = [0, 1], sizes = [8, 255], strides = [1, 1]} : vector<8x256xf32> to vector<8x255xf32>
    %114 = vector.extract_strided_slice %84 {offsets = [0, 0], sizes = [8, 1], strides = [1, 1]} : vector<8x256xf32> to vector<8x1xf32>
    %115 = tpu.concatenate %113, %114 in 1 : vector<8x255xf32>, vector<8x1xf32> -> vector<8x256xf32>
    %116 = vector.extract_strided_slice %4 {offsets = [5, 0], sizes = [1, 256], strides = [1, 1]} : vector<9x256xf32> to vector<1x256xf32>
    %117 = vector.broadcast %116 : vector<1x256xf32> to vector<8x256xf32>
    %118 = arith.mulf %115, %117 : vector<8x256xf32>
    %119 = vector.extract_strided_slice %84 {offsets = [0, 15], sizes = [8, 241], strides = [1, 1]} : vector<8x256xf32> to vector<8x241xf32>
    %120 = vector.extract_strided_slice %84 {offsets = [0, 0], sizes = [8, 15], strides = [1, 1]} : vector<8x256xf32> to vector<8x15xf32>
    %121 = tpu.concatenate %119, %120 in 1 : vector<8x241xf32>, vector<8x15xf32> -> vector<8x256xf32>
    %122 = vector.extract_strided_slice %4 {offsets = [6, 0], sizes = [1, 256], strides = [1, 1]} : vector<9x256xf32> to vector<1x256xf32>
    %123 = vector.broadcast %122 : vector<1x256xf32> to vector<8x256xf32>
    %124 = arith.mulf %121, %123 : vector<8x256xf32>
    %125 = vector.extract_strided_slice %84 {offsets = [0, 16], sizes = [8, 240], strides = [1, 1]} : vector<8x256xf32> to vector<8x240xf32>
    %126 = vector.extract_strided_slice %84 {offsets = [0, 0], sizes = [8, 16], strides = [1, 1]} : vector<8x256xf32> to vector<8x16xf32>
    %127 = tpu.concatenate %125, %126 in 1 : vector<8x240xf32>, vector<8x16xf32> -> vector<8x256xf32>
    %128 = vector.extract_strided_slice %4 {offsets = [7, 0], sizes = [1, 256], strides = [1, 1]} : vector<9x256xf32> to vector<1x256xf32>
    %129 = vector.broadcast %128 : vector<1x256xf32> to vector<8x256xf32>
    %130 = arith.mulf %127, %129 : vector<8x256xf32>
    %131 = vector.extract_strided_slice %84 {offsets = [0, 17], sizes = [8, 239], strides = [1, 1]} : vector<8x256xf32> to vector<8x239xf32>
    %132 = vector.extract_strided_slice %84 {offsets = [0, 0], sizes = [8, 17], strides = [1, 1]} : vector<8x256xf32> to vector<8x17xf32>
    %133 = tpu.concatenate %131, %132 in 1 : vector<8x239xf32>, vector<8x17xf32> -> vector<8x256xf32>
    %134 = vector.extract_strided_slice %4 {offsets = [8, 0], sizes = [1, 256], strides = [1, 1]} : vector<9x256xf32> to vector<1x256xf32>
    %135 = vector.broadcast %134 : vector<1x256xf32> to vector<8x256xf32>
    %136 = arith.mulf %133, %135 : vector<8x256xf32>
    %137 = tpu.concatenate %91, %97, %103, %109, %112, %118, %124, %130, %136 in 0 : vector<8x256xf32>, vector<8x256xf32>, vector<8x256xf32>, vector<8x256xf32>, vector<8x256xf32>, vector<8x256xf32>, vector<8x256xf32>, vector<8x256xf32>, vector<8x256xf32> -> vector<72x256xf32>
    %cst_26 = arith.constant dense<0.000000e+00> : vector<8x256xf32>
    %138 = tpu.matmul %85, %137, %cst_26 {dimension_numbers = #tpu.dot_dimension_numbers<[1], [0], [0], [1], [0, 0, 1, 1], [], []>} : vector<8x72xf32>, vector<72x256xf32>, vector<8x256xf32> -> vector<8x256xf32>
    %cst_27 = arith.constant dense<0xFF800000> : vector<256xf32>
    %139 = vector.multi_reduction <maximumf>, %138, %cst_27 [0] : vector<8x256xf32> to vector<256xf32>
    %140 = vector.shape_cast %139 : vector<256xf32> to vector<1x256xf32>
    %cst_28 = arith.constant 1.000000e+00 : f32
    %141 = vector.broadcast %cst_28 : f32 to vector<1x256xf32>
    %142 = arith.maximumf %140, %141 : vector<1x256xf32>
    %143 = tpu.reciprocal %142 {approx = true} : vector<1x256xf32> -> vector<1x256xf32>
    %144 = vector.broadcast %143 : vector<1x256xf32> to vector<8x256xf32>
    %145 = arith.mulf %3, %144 : vector<8x256xf32>
    %146 = math.tanh %145 : vector<8x256xf32>
    %147 = vector.broadcast %142 : vector<1x256xf32> to vector<8x256xf32>
    %148 = arith.mulf %147, %146 : vector<8x256xf32>
    %149 = arith.addf %138, %148 : vector<8x256xf32>
    %150 = arith.addf %149, %1 : vector<8x256xf32>
    %c0_29 = arith.constant 0 : index
    %c0_30 = arith.constant 0 : index
    %c0_31 = arith.constant 0 : index
    %151 = vector.load %arg10[%c0_29, %c0_30, %c0_31] : memref<1x8x256xf32, #tpu.memory_space<vmem>>, vector<1x8x256xf32>
    %152 = vector.shape_cast %151 : vector<1x8x256xf32> to vector<8x256xf32>
    %153 = vector.shape_cast %150 : vector<8x256xf32> to vector<1x8x256xf32>
    tpu.vector_store %arg10[%c0_29, %c0_30, %c0_31], %153 {strides = array<i32>} : memref<1x8x256xf32, #tpu.memory_space<vmem>>, vector<1x8x256xf32>,
    return
  }
  func.func @transform_0(%arg0: i32) -> (i32, i32, i32) {
    %c0_i32 = arith.constant 0 : i32
    %c0_i32_0 = arith.constant 0 : i32
    %c0_i32_1 = arith.constant 0 : i32
    return %arg0, %c0_i32, %c0_i32_0 : i32, i32, i32
  }
  func.func @transform_1(%arg0: i32) -> (i32, i32, i32) {
    %c0_i32 = arith.constant 0 : i32
    %c0_i32_0 = arith.constant 0 : i32
    %c0_i32_1 = arith.constant 0 : i32
    return %arg0, %c0_i32, %c0_i32_0 : i32, i32, i32
  }
  func.func @transform_2(%arg0: i32) -> (i32, i32) {
    %c0_i32 = arith.constant 0 : i32
    %c0_i32_0 = arith.constant 0 : i32
    %c0_i32_1 = arith.constant 0 : i32
    return %c0_i32, %c0_i32_0 : i32, i32
  }
  func.func @transform_3(%arg0: i32) -> (i32, i32) {
    %c0_i32 = arith.constant 0 : i32
    %c0_i32_0 = arith.constant 0 : i32
    %c0_i32_1 = arith.constant 0 : i32
    return %c0_i32, %c0_i32_0 : i32, i32
  }
  func.func @transform_4(%arg0: i32) -> (i32, i32) {
    %c0_i32 = arith.constant 0 : i32
    %c0_i32_0 = arith.constant 0 : i32
    %c0_i32_1 = arith.constant 0 : i32
    return %c0_i32, %c0_i32_0 : i32, i32
  }
  func.func @transform_5(%arg0: i32) -> (i32, i32) {
    %c0_i32 = arith.constant 0 : i32
    %c0_i32_0 = arith.constant 0 : i32
    %c0_i32_1 = arith.constant 0 : i32
    return %c0_i32, %c0_i32_0 : i32, i32
  }
  func.func @transform_6(%arg0: i32) -> (i32, i32) {
    %c0_i32 = arith.constant 0 : i32
    %c0_i32_0 = arith.constant 0 : i32
    %c0_i32_1 = arith.constant 0 : i32
    return %c0_i32, %c0_i32_0 : i32, i32
  }
  func.func @transform_7(%arg0: i32) -> (i32, i32) {
    %c0_i32 = arith.constant 0 : i32
    %c0_i32_0 = arith.constant 0 : i32
    %c0_i32_1 = arith.constant 0 : i32
    return %c0_i32, %c0_i32_0 : i32, i32
  }
  func.func @transform_8(%arg0: i32) -> (i32, i32) {
    %c0_i32 = arith.constant 0 : i32
    %c0_i32_0 = arith.constant 0 : i32
    %c0_i32_1 = arith.constant 0 : i32
    return %c0_i32, %c0_i32_0 : i32, i32
  }
  func.func @transform_9(%arg0: i32) -> (i32, i32, i32) {
    %c0_i32 = arith.constant 0 : i32
    %c0_i32_0 = arith.constant 0 : i32
    %c0_i32_1 = arith.constant 0 : i32
    return %arg0, %c0_i32, %c0_i32_0 : i32, i32, i32
  }
}

</mosaic_0001>

<bundles_post_ra>
// kernel: matrix_q_update.4
= control target key start
LH: loop header
LB: loop body
LE: loop exit
PB: predicated region body
PF: predicated region fallthrough
CT: control target
= control target key end

     0   :  { %7 = vsyncpa [#allocation3], 0  ;;  %s1009_s0 = inlined_call_operand.vmem [shape: f32[8,16,16], index: 0, kind: input, shape index: {}]   ;;  %s1010_s1 = inlined_call_operand.hbm [shape: f32[8,16,16], index: 1, kind: input, shape index: {}]   ;;  %s1011_s2 = inlined_call_operand.vmem [shape: f32[8,16,16], index: 2, kind: output, shape index: {}]  }
   0x1   :  { %9 = vsyncpa [#allocation3 + $0x1], 0  ;;  %s866_s9 = smov 0   ;;  %s868_s10 = smov 0  }
   0x2   :  { %s870_s11 = smov 0   ;;  %s872_s12 = smov 0  }
   0x3 LB: > { %s633_s13 = sadd.s32 4294967295, %s846_s12   ;;  %s886_s14 = sadd.s32 1, %s846_s12   ;;  %s846_s12 = sphi %s872_s12, %s1018_s12   ;;  %s842_s11 = sphi %s870_s11, %s1017_s11   ;;  %s838_s10 = sphi %s868_s10, %s1016_s10   ;;  %s834_s9 = sphi %s866_s9, %s1015_s9  }
   0x4   : > { %s45_s15 = ssub.s32 %s846_s12, %s886_s14  ;;  %s48_s16 = sadd.s32 1, %s842_s11 }
   0x5   : > { %p46_p0 = scmp.eq.s32.totalorder %s45_s15, 0  ;;  %p55_p1 = scmp.ne.s32.totalorder %s842_s11, %s838_s10 }
   0x6   : > { %p56_p2 = scmp.eq.s32.totalorder %s846_s12, 0  ;;  %p61_p3 = scmp.ne.s32.totalorder %s838_s10, %s834_s9 }
   0x7   : > { %s896_s17 = scalar_select %p46_p0, %s842_s11, %s48_s16  }
   0x8   : > { %p57_p4 = por %p56_p2, %p55_p1  ;;  %p62_p5 = scmp.eq.s32.totalorder %s633_s13, 0 }
   0x9   : > { %p747_p6 = scmp.lt.s32.totalorder %s846_s12, 2  ;;  %s121_s19 = sand.u32 1, %s842_s11  }
   0xa   : > { %p901_p7 = por %p62_p5, %p61_p3  ;;  %s637_s20 = sshll.u32 %s121_s19, 6 }
   0xb   : > { %s678_s21 = sshll.u32 %s846_s12, 10  ;;  %s125_s25 = scalar_lea.vmem [#allocation2], %s637_s20 }
   0xc   : > { %s910_s24 = scalar_lea.hbm %s1010_s1, %s678_s21  ;;  %s133_s26 = sshll.u32 %s125_s25, 4  ;;  %s912_s26 = int_to_ptr.vmem [resolvable:$true] %s133_s26 }
   0xd   : > { %p914_p8 = pnand %p747_p6, %p57_p4  ;;  %s919_s28 = scalar_lea.sflag [#allocation3], %s121_s19 }
   0xe   : > { %s782_s29 = scalar_lea.hbm %s910_s24, 1024  ;;  %s787_s4 = scalar_lea.hbm %s1010_s1, 2048 }
   0xf   : > { %p783_p10 = scmp.ne.s32.totalorder %s910_s24, %s782_s29  ;;  %p784_p11 = pneg %p914_p8 }
  0x10   : > { %p788_p0 = scmp.lt.u32.totalorder %s910_s24, %s1010_s1  ;;  %p789_p1 = scmp.lt.u32.totalorder %s787_s4, %s782_s29 }
  0x11   : > { %p785_p12 = pnand %p784_p11, %p783_p10  ;;  %p791_p3 = scmp.lt.u32.totalorder %s782_s29, %s910_s24 }
  0x12   : > { %p790_p2 = por %p789_p1, %p788_p0 }
  0x13   : > { %p786_p13 = pneg %p785_p12 }
  0x14   : > { %p792_p4 = por %p791_p3, %p790_p2 }
  0x16   : > { %p793_p5 = pnand %p792_p4, %p786_p13 }
  0x18   : > { %796 = shalt.err (!%p793_p5)
}
  0x19   : > { %s797_s7 = scalar_lea.vmem %s912_s26, 1024  ;;  %s848_s8 = smov [#allocation2]  }
  0x1a   : > { %p798_p6 = scmp.ne.s32.totalorder %s912_s26, %s797_s7  ;;  %s802_s9 = sshll.u32 %s848_s8, 4  ;;  %s803_s9 = int_to_ptr.vmem [resolvable:$false] %s802_s9 }
  0x1b   : > { %s804_s15 = scalar_lea.vmem %s803_s9, 2048  ;;  %p805_p9 = scmp.lt.s32.totalorder %s912_s26, %s803_s9 }
  0x1c   : > { %p800_p10 = pnand %p798_p6, %p784_p11  ;;  %p806_p0 = scmp.lt.s32.totalorder %s804_s15, %s797_s7 }
  0x1e   : > { %p801_p12 = pneg %p800_p10  ;;  %p807_p1 = por %p806_p0, %p805_p9 }
  0x20   : > { %p808_p2 = pnand %p807_p1, %p801_p12 }
  0x22   : > { %811 = shalt.err (!%p808_p2)
}
  0x23   : > { %s849_s16 = smov 128   ;;  %s850_s19 = smov 8  }
  0x24   : > { %746 = dma.hbm_to_vmem [thread:$0]  (!%p914_p8), %s910_s24, 1024, %s912_s26, %s919_s28, %s849_s16, %s849_s16, %s850_s19  }
  0x25   : > { %p141_p11 = scmp.lt.s32.totalorder %s846_s12, 3  ;;  %p1014_p13 = scmp.ge.s32.totalorder %s846_s12, 1 }
  0x27   : > { %p142_p3 = pnand %p1014_p13, %p141_p11 }
  0x28   : > { %s147_s20 = sand.u32 (!%p142_p3), 1, %s838_s10  }
  0x29   : > { %145 = sbr.rel (%p142_p3) target bundleno = 275 (0x113), region = 28  ;;  %s642_s21 = sshll.u32 (!%p142_p3), %s147_s20, 6 }
  0x2a   : > { %s148_s22 = scalar_lea.sflag (!%p142_p3), [#allocation3], %s147_s20  ;;  %s151_s23 = scalar_lea.vmem (!%p142_p3), [#allocation2], %s642_s21 }
  0x30   : > { %829 = dma.done.wait (%p901_p7), %s148_s22, 1024  }
  0x31   : > { %831 = vsyncadd (%p901_p7), %s148_s22, 4294966272  ;;  %s643_s25 = sshll.u32 %s633_s13, 2  ;;  %vm198_vm0 = vcmask 130048   ;;  %v196_v0 = vld [vmem:[%s151_s23] sm:$0xff]  ;;  %v197_v1 = vld [vmem:[%s151_s23 + $0x8] sm:$0xff] }
  0x32   : > { %p180_p9 = scmp.lt.s32.totalorder %s643_s25, 7  ;;  %v653_v2 = vld [vmem:[%s151_s23 + $0x10] sm:$0xff]  ;;  %v725_v3 = vpack.c.bf16 %v197_v1, %v196_v0  ;;  %v654_v4 = vld [vmem:[%s151_s23 + $0x18] sm:$0xff]  ;;  %v661_v8 = vld [vmem:[%s151_s23 + $0x20] sm:$0xff] }
  0x33   : > { %v729_v6 = vpack.c.bf16 %v654_v4, %v653_v2  ;;  %v662_v9 = vld [vmem:[%s151_s23 + $0x28] sm:$0xff]  ;;  %v669_v11 = vld [vmem:[%s151_s23 + $0x30] sm:$0xff]  ;;  %v670_v12 = vld [vmem:[%s151_s23 + $0x38] sm:$0xff] }
  0x34   : > { %s1020_s25 = smov (!%p180_p9, %s643_s25), 7  ;;  %726 = vmatprep.subr.bf16.mxu0 %v725_v3  ;;  %v733_v10 = vpack.c.bf16 %v662_v9, %v661_v8  ;;  %v737_v14 = vpack.c.bf16 %v670_v12, %v669_v11 }
  0x35   : > { %s679_s24 = sshll.u32 %s1020_s25, 4  ;;  %728 = vmatpush3.bf16.msra.mxu0 %v725_v3  ;;  %730 = vmatprep.subr.bf16.mxu1 %v729_v6 }
  0x36   : > { %s965_s28 = scalar_lea.vmem %s1009_s0, %s679_s24  ;;  %732 = vmatpush3.bf16.msra.mxu1 %v729_v6  ;;  %734 = vmatprep.subr.bf16.mxu0 %v733_v10  ;;  %s192_s18 = scalar_lea.vmem %s1011_s2, %s679_s24 }
  0x37   : > { %v194_v5 = vld [vmem:[%s965_s28] sm:$0xff]  ;;  %v651_v7 = vld [vmem:[%s965_s28 + $0x10] sm:$0xff]  ;;  %v195_v13 = vld [vmem:[%s965_s28 + $0x8] sm:$0xff]  ;;  %738 = vmatprep.subr.bf16.mxu1 %v737_v14 }
  0x38   : > { %701 = vmatprep.mubr.msk.f32.mxu0 %vm198_vm0, %v194_v5  ;;  %708 = vmatprep.mubr.msk.f32.mxu1 %vm198_vm0, %v651_v7  ;;  %v652_v15 = vld [vmem:[%s965_s28 + $0x18] sm:$0xff]  ;;  %v659_v16 = vld [vmem:[%s965_s28 + $0x20] sm:$0xff]  ;;  %v667_v17 = vld [vmem:[%s965_s28 + $0x30] sm:$0xff] }
  0x39   : > { %702 = vmatmul.mubr.msk.f32.vlgmr.msra.gmra.mrb[0].mxu0 %vm198_vm0, %v195_v13  ;;  %709 = vmatmul.mubr.msk.f32.vlgmr.msra.gmra.mrb[0].mxu1 %vm198_vm0, %v652_v15  ;;  %v660_v18 = vld [vmem:[%s965_s28 + $0x28] sm:$0xff]  ;;  %v668_v19 = vld [vmem:[%s965_s28 + $0x38] sm:$0xff] }
  0x3a   : > { %736 = vmatpush3.bf16.msra.mxu0 %v733_v10  ;;  %740 = vmatpush3.bf16.msra.mxu1 %v737_v14 }
  0x3b   : > { %715 = vmatprep.mubr.msk.f32.mxu0 %vm198_vm0, %v659_v16  ;;  %722 = vmatprep.mubr.msk.f32.mxu1 %vm198_vm0, %v667_v17 }
  0x3d   : > { %716 = vmatmul.mubr.msk.f32.vlgmr.msra.gmra.mrb[2].mxu0 %vm198_vm0, %v660_v18  ;;  %723 = vmatmul.mubr.msk.f32.vlgmr.msra.gmra.mrb[2].mxu1 %vm198_vm0, %v668_v19 }
 0x10c   : > { %v703_v20 = vpop.f32.mrb[0].mxu0  ;;  %v710_v22 = vpop.f32.mrb[0].mxu1 }
 0x10d   : > { %281 = vst.msk [vmem:[%s192_s18 + $0x8] sm:$0xff] %vm198_vm0, %v703_v20  ;;  %v271_v21 = vpop.f32.mrb[1].mxu0  ;;  %658 = vst.msk [vmem:[%s192_s18 + $0x18] sm:$0xff] %vm198_vm0, %v710_v22  ;;  %v360_v23 = vpop.f32.mrb[1].mxu1 }
 0x10e   : > { %280 = vst.msk [vmem:[%s192_s18] sm:$0xff] %vm198_vm0, %v271_v21  ;;  %657 = vst.msk [vmem:[%s192_s18 + $0x10] sm:$0xff] %vm198_vm0, %v360_v23 }
 0x110   : > { %v717_v24 = vpop.f32.mrb[2].mxu0  ;;  %v724_v26 = vpop.f32.mrb[2].mxu1 }
 0x111   : > { %666 = vst.msk [vmem:[%s192_s18 + $0x28] sm:$0xff] %vm198_vm0, %v717_v24  ;;  %v450_v25 = vpop.f32.mrb[3].mxu0  ;;  %674 = vst.msk [vmem:[%s192_s18 + $0x38] sm:$0xff] %vm198_vm0, %v724_v26  ;;  %v540_v27 = vpop.f32.mrb[3].mxu1 }
 0x112   : > { %665 = vst.msk [vmem:[%s192_s18 + $0x20] sm:$0xff] %vm198_vm0, %v450_v25  ;;  %673 = vst.msk [vmem:[%s192_s18 + $0x30] sm:$0xff] %vm198_vm0, %v540_v27 }
 0x113 PF: > { %p12_p7 = scmp.ge.s32.totalorder %s886_s14, 4   ;;  %s1015_s9 = smov %s838_s10 }
 0x114   : > { %s1016_s10 = smov %s842_s11  ;;  %s1017_s11 = smov %s896_s17 }
 0x115   : > { %s1018_s12 = smov %s886_s14  ;;  %14 = sbr.rel (!%p12_p7) target bundleno = 3 (0x3), region = 80 }
 0x11c   :  { %576 = vsyncpa [#allocation3], 1 }
 0x11d   :  { %578 = vsyncpa [#allocation3 + $0x1], 1 }

// kernel: matrix_q_update.5
= control target key start
LH: loop header
LB: loop body
LE: loop exit
PB: predicated region body
PF: predicated region fallthrough
CT: control target
= control target key end

     0   :  { %v405_v3 = vmov 0.0   ;;  %vm22_vm0 = vcmask 130048   ;;  %vm349_vm1 = vcmask 261120   ;;  %s482_s0 = inlined_call_operand.vmem [shape: f32[16,288], index: 0, kind: input, shape index: {}]   ;;  %s483_s1 = inlined_call_operand.vmem [shape: f32[16,16], index: 1, kind: input, shape index: {}]   ;;  %s484_s2 = inlined_call_operand.vmem [shape: f32[16,16], index: 2, kind: input, shape index: {}]   ;;  %s485_s3 = inlined_call_operand.vmem [shape: f32[16,288], index: 3, kind: output, shape index: {}]  }
   0x1   :  { %v17_v0 = vld [vmem:[%s482_s0 + $0x8] sm:$0xff]  ;;  %v20_v1 = vld [vmem:[%s482_s0 + $0x20] sm:$0xff]  ;;  %93 = vmatprep.mubr.f32.mxu0 %v405_v3  ;;  %v19_v5 = vld [vmem:[%s482_s0 + $0x18] sm:$0xff] }
   0x2   :  { %v16_v2 = vld [vmem:[%s482_s0] sm:$0xff]  ;;  %v388_v4 = vpack.c.bf16 %v20_v1, %v17_v0  ;;  %v18_v6 = vld [vmem:[%s482_s0 + $0x10] sm:$0xff]  ;;  %v21_v7 = vld [vmem:[%s482_s0 + $0x28] sm:$0xff] }
   0x3   :  { %v390_v8 = vpack.c.bf16 %v19_v5, %v16_v2  ;;  %v392_v9 = vpack.c.bf16 %v21_v7, %v18_v6  ;;  %v14_v10 = vld [vmem:[%s483_s1] sm:$0xff]  ;;  %v15_v11 = vld [vmem:[%s483_s1 + $0x8] sm:$0xff] }
   0x4   :  { %389 = vmatprep.subr.bf16.mxu0 %v388_v4  ;;  %378 = vmatprep.mubr.msk.f32.mxu1 %vm22_vm0, %v14_v10  ;;  %v187_v12 = vld [vmem:[%s484_s2] sm:$0xff]  ;;  %v188_v28 = vld [vmem:[%s484_s2 + $0x8] sm:$0xff] }
   0x5   :  { %391 = vmatpush1.bf16.msra.mxu0 %v390_v8  ;;  %393 = vmatprep.subr.bf16.mxu1 %v392_v9 }
   0x6   :  { %395 = vmatpush3.bf16.msra.mxu1 %v392_v9 }
   0x8   :  { %358 = vmatmul.mubr.msk.f32.vlgmr.msra.gmra.mrb[0].mxu0 %vm22_vm0, %v14_v10 }
   0x9   :  { %379 = vmatmul.mubr.msk.f32.vlgmr.msra.gmra.mrb[0].mxu1 %vm22_vm0, %v15_v11  ;;  %99 = vmatprep.mubr.f32.mxu0 %v405_v3 }
   0xa   :  { %259 = vmatprep.mubr.f32.mxu1 %v405_v3 }
   0xc   :  { %359 = vmatmul.mubr.msk.f32.gmra.mrb[2].mxu0 %vm22_vm0, %v15_v11 }
   0xd   :  { %385 = vmatprep.mubr.msk.f32.mxu0 %vm22_vm0, %v187_v12 }
  0xdb   :  { %v95_v13 = vpop.f32.mrb[0].mxu0 }
  0xdc   :  { %v97_v14 = vpop.f32.mrb[1].mxu0  ;;  %v380_v15 = vpop.f32.mrb[0].mxu1  ;;  %v181_v20 = vmax.f32 %v95_v13, 0.0 }
  0xdd   :  { %v186_v16 = vmax.f32 %v380_v15, 0.0  ;;  %v172_v17 = vpop.f32.mrb[1].mxu1  ;;  %v182_v24 = vmax.f32 %v97_v14, 0.0 }
  0xde   :  { %v183_v18 = vmax.f32 %v172_v17, 0.0 }
  0xdf   :  { %v101_v19 = vpop.f32.mrb[2].mxu0 }
  0xe0   :  { %v400_v21 = vpack.c.bf16 %v186_v16, %v183_v18  ;;  %v184_v22 = vmax.f32 %v101_v19, 0.0  ;;  %v103_v23 = vpop.f32.mrb[3].mxu0 }
  0xe1   :  { %v185_v25 = vmax.f32 %v103_v23, 0.0 }
  0xe2   :  { %v398_v26 = vpack.c.bf16 %v184_v22, %v181_v20  ;;  %401 = vmatprep.subr.bf16.mxu0 %v400_v21 }
  0xe3   :  { %v396_v27 = vpack.c.bf16 %v185_v25, %v182_v24  ;;  %403 = vmatpush3.bf16.msra.mxu0 %v400_v21 }
  0xe5   :  { %397 = vmatprep.subr.bf16.mxu1 %v396_v27 }
  0xe6   :  { %399 = vmatpush1.bf16.msra.mxu1 %v398_v26  ;;  %386 = vmatmul.mubr.msk.f32.vlgmr.msra.gmra.mrb[4].mxu0 %vm22_vm0, %v188_v28 }
  0xe9   :  { %362 = vmatmul.mubr.msk.f32.vlgmr.msra.gmra.mrb[2].mxu1 %vm22_vm0, %v187_v12 }
  0xea   :  { %265 = vmatprep.mubr.f32.mxu1 %v405_v3 }
  0xed   :  { %363 = vmatmul.mubr.msk.f32.gmra.mrb[4].mxu1 %vm22_vm0, %v188_v28 }
 0x1b9   :  { %v387_v29 = vpop.f32.mrb[4].mxu0 }
 0x1ba   :  { %353 = vst.msk [vmem:[%s485_s3 + $0x28] sm:$0xff] %vm349_vm1, %v387_v29  ;;  %v338_v30 = vpop.f32.mrb[5].mxu0 }
 0x1bb   :  { %350 = vst.msk [vmem:[%s485_s3 + $0x10] sm:$0xff] %vm349_vm1, %v338_v30 }
 0x1bc   :  { %v261_v31 = vpop.f32.mrb[2].mxu1 }
 0x1bd   :  { %347 = vst [vmem:[%s485_s3] sm:$0xff] %v261_v31  ;;  %v263_v32 = vpop.f32.mrb[3].mxu1 }
 0x1be   :  { %348 = vst [vmem:[%s485_s3 + $0x8] sm:$0xff] %v263_v32 }
 0x1c0   :  { %v267_v33 = vpop.f32.mrb[4].mxu1 }
 0x1c1   :  { %351 = vst [vmem:[%s485_s3 + $0x18] sm:$0xff] %v267_v33  ;;  %v269_v34 = vpop.f32.mrb[5].mxu1 }
 0x1c2   :  { %352 = vst [vmem:[%s485_s3 + $0x20] sm:$0xff] %v269_v34 }

// kernel: reverse.0
= control target key start
LH: loop header
LB: loop body
LE: loop exit
PB: predicated region body
PF: predicated region fallthrough
CT: control target
= control target key end

     0   :  { %v103_v3 = vlaneseq  ;;  %v96_v18 = vld [vmem:[#allocation0 + $0x7] ss:$-1 sm:$0xff]  ;;  %v110_v19 = vld [vmem:[#allocation0 + $0x17] ss:$-1 sm:$0xff]  ;;  %s604_s0 = inlined_call_operand.vmem [shape: f32[2,8,16,7], index: 0, kind: input, shape index: {}]   ;;  %s605_s1 = inlined_call_operand.vmem [shape: f32[2,8,16,7], index: 1, kind: output, shape index: {}]  }
   0x1   :  { %v60_v0 = vld [vmem:[%s604_s0] sm:$0xff]  ;;  %v62_v1 = vld [vmem:[%s604_s0 + $0x8] sm:$0xff]  ;;  %v64_v2 = vld [vmem:[%s604_s0 + $0x10] sm:$0xff]  ;;  %v97_v20 = vrot.slane %v96_v18, 1  ;;  %v111_v21 = vrot.slane %v110_v19, 1 }
   0x2   :  { %61 = vst [vmem:[#allocation0 + $0x8] sm:$0xff] %v60_v0  ;;  %63 = vst [vmem:[#allocation0 + $0x18] sm:$0xff] %v62_v1  ;;  %v66_v4 = vld [vmem:[%s604_s0 + $0x18] sm:$0xff]  ;;  %v68_v5 = vld [vmem:[%s604_s0 + $0x20] sm:$0xff]  ;;  %v500_v10 = vshrl.u32 %v103_v3, 7 }
   0x3   :  { %65 = vst [vmem:[#allocation0 + $0x28] sm:$0xff] %v64_v2  ;;  %v70_v6 = vld [vmem:[%s604_s0 + $0x28] sm:$0xff]  ;;  %67 = vst [vmem:[#allocation0 + $0x38] sm:$0xff] %v66_v4  ;;  %v72_v7 = vld [vmem:[%s604_s0 + $0x30] sm:$0xff] }
   0x4   :  { %69 = vst [vmem:[#allocation0 + $0x48] sm:$0xff] %v68_v5  ;;  %71 = vst [vmem:[#allocation0 + $0x58] sm:$0xff] %v70_v6  ;;  %v74_v8 = vld [vmem:[%s604_s0 + $0x38] sm:$0xff]  ;;  %v76_v9 = vld [vmem:[%s604_s0 + $0x40] sm:$0xff]  ;;  %vm105_vm0 = vcmp.lt.s32.totalorder %v500_v10, 7 }
   0x5   :  { %73 = vst [vmem:[#allocation0 + $0x68] sm:$0xff] %v72_v7  ;;  %75 = vst [vmem:[#allocation0 + $0x78] sm:$0xff] %v74_v8  ;;  %v78_v11 = vld [vmem:[%s604_s0 + $0x48] sm:$0xff]  ;;  %v80_v12 = vld [vmem:[%s604_s0 + $0x50] sm:$0xff] }
   0x6   :  { %77 = vst [vmem:[#allocation0 + $0x88] sm:$0xff] %v76_v9  ;;  %v82_v13 = vld [vmem:[%s604_s0 + $0x58] sm:$0xff]  ;;  %79 = vst [vmem:[#allocation0 + $0x98] sm:$0xff] %v78_v11  ;;  %v84_v14 = vld [vmem:[%s604_s0 + $0x60] sm:$0xff] }
   0x7   :  { %81 = vst [vmem:[#allocation0 + $0xa8] sm:$0xff] %v80_v12  ;;  %83 = vst [vmem:[#allocation0 + $0xb8] sm:$0xff] %v82_v13  ;;  %v86_v15 = vld [vmem:[%s604_s0 + $0x68] sm:$0xff]  ;;  %v88_v16 = vld [vmem:[%s604_s0 + $0x70] sm:$0xff] }
   0x8   :  { %85 = vst [vmem:[#allocation0 + $0xc8] sm:$0xff] %v84_v14  ;;  %87 = vst [vmem:[#allocation0 + $0xd8] sm:$0xff] %v86_v15  ;;  %v90_v17 = vld [vmem:[%s604_s0 + $0x78] sm:$0xff]  ;;  %v124_v22 = vld [vmem:[#allocation0 + $0x27] ss:$-1 sm:$0xff] }
   0x9   :  { %89 = vst [vmem:[#allocation0 + $0xe8] sm:$0xff] %v88_v16  ;;  %91 = vst [vmem:[#allocation0 + $0xf8] sm:$0xff] %v90_v17  ;;  %v138_v23 = vld [vmem:[#allocation0 + $0x37] ss:$-1 sm:$0xff]  ;;  %v125_v24 = vrot.slane %v124_v22, 1 }
   0xa   :  { %v139_v25 = vrot.slane %v138_v23, 1  ;;  %v152_v26 = vld [vmem:[#allocation0 + $0x47] ss:$-1 sm:$0xff]  ;;  %v166_v27 = vld [vmem:[#allocation0 + $0x57] ss:$-1 sm:$0xff]  ;;  %98 = vst [vmem:[#allocation1] sm:$0xff] %v97_v20 }
   0xb   :  { %v101_v28 = vld [vmem:[#allocation0 + $0xf] ss:$-1 sm:$0xff]  ;;  %112 = vst [vmem:[#allocation1 + $0x8] sm:$0xff] %v111_v21  ;;  %v115_v29 = vld [vmem:[#allocation0 + $0x1f] ss:$-1 sm:$0xff]  ;;  %126 = vst [vmem:[#allocation1 + $0x10] sm:$0xff] %v125_v24 }
   0xc   :  { %v129_v30 = vld [vmem:[#allocation0 + $0x2f] ss:$-1 sm:$0xff]  ;;  %v102_v31 = vrot.slane %v101_v28, 1  ;;  %v116_v32 = vrot.slane %v115_v29, 1  ;;  %140 = vst [vmem:[#allocation1 + $0x18] sm:$0xff] %v139_v25  ;;  %v153_v35 = vrot.slane %v152_v26, 1 }
   0xd   :  { %v130_v33 = vrot.slane %v129_v30, 1  ;;  %v143_v34 = vld [vmem:[#allocation0 + $0x3f] ss:$-1 sm:$0xff]  ;;  %v157_v37 = vld [vmem:[#allocation0 + $0x4f] ss:$-1 sm:$0xff]  ;;  %v167_v38 = vrot.slane %v166_v27, 1 }
   0xe   :  { %v144_v36 = vrot.slane %v143_v34, 1  ;;  %v171_v39 = vld [vmem:[#allocation0 + $0x5f] ss:$-1 sm:$0xff]  ;;  %106 = vst.msk [vmem:[#allocation1] sm:$0xff] %vm105_vm0, %v102_v31  ;;  %120 = vst.msk [vmem:[#allocation1 + $0x8] sm:$0xff] %vm105_vm0, %v116_v32  ;;  %v158_v40 = vrot.slane %v157_v37, 1 }
   0xf   :  { %134 = vst.msk [vmem:[#allocation1 + $0x10] sm:$0xff] %vm105_vm0, %v130_v33  ;;  %154 = vst [vmem:[#allocation1 + $0x20] sm:$0xff] %v153_v35  ;;  %v172_v41 = vrot.slane %v171_v39, 1  ;;  %v180_v42 = vld [vmem:[#allocation0 + $0x67] ss:$-1 sm:$0xff] }
  0x10   :  { %v185_v43 = vld [vmem:[#allocation0 + $0x6f] ss:$-1 sm:$0xff]  ;;  %148 = vst.msk [vmem:[#allocation1 + $0x18] sm:$0xff] %vm105_vm0, %v144_v36  ;;  %168 = vst [vmem:[#allocation1 + $0x28] sm:$0xff] %v167_v38  ;;  %v181_v44 = vrot.slane %v180_v42, 1 }
  0x11   :  { %v186_v45 = vrot.slane %v185_v43, 1  ;;  %v194_v46 = vld [vmem:[#allocation0 + $0x77] ss:$-1 sm:$0xff]  ;;  %v199_v47 = vld [vmem:[#allocation0 + $0x7f] ss:$-1 sm:$0xff]  ;;  %162 = vst.msk [vmem:[#allocation1 + $0x20] sm:$0xff] %vm105_vm0, %v158_v40 }
  0x12   :  { %176 = vst.msk [vmem:[#allocation1 + $0x28] sm:$0xff] %vm105_vm0, %v172_v41  ;;  %v195_v48 = vrot.slane %v194_v46, 1  ;;  %v200_v49 = vrot.slane %v199_v47, 1  ;;  %v208_v50 = vld [vmem:[#allocation0 + $0x87] ss:$-1 sm:$0xff]  ;;  %182 = vst [vmem:[#allocation1 + $0x30] sm:$0xff] %v181_v44 }
  0x13   :  { %v213_v51 = vld [vmem:[#allocation0 + $0x8f] ss:$-1 sm:$0xff]  ;;  %v209_v52 = vrot.slane %v208_v50, 1  ;;  %v222_v54 = vld [vmem:[#allocation0 + $0x97] ss:$-1 sm:$0xff]  ;;  %190 = vst.msk [vmem:[#allocation1 + $0x30] sm:$0xff] %vm105_vm0, %v186_v45 }
  0x14   :  { %v214_v53 = vrot.slane %v213_v51, 1  ;;  %v227_v55 = vld [vmem:[#allocation0 + $0x9f] ss:$-1 sm:$0xff]  ;;  %196 = vst [vmem:[#allocation1 + $0x38] sm:$0xff] %v195_v48  ;;  %v223_v56 = vrot.slane %v222_v54, 1 }
  0x15   :  { %v228_v57 = vrot.slane %v227_v55, 1  ;;  %v236_v58 = vld [vmem:[#allocation0 + $0xa7] ss:$-1 sm:$0xff]  ;;  %v241_v59 = vld [vmem:[#allocation0 + $0xaf] ss:$-1 sm:$0xff]  ;;  %204 = vst.msk [vmem:[#allocation1 + $0x38] sm:$0xff] %vm105_vm0, %v200_v49 }
  0x16   :  { %210 = vst [vmem:[#allocation1 + $0x40] sm:$0xff] %v209_v52  ;;  %v237_v60 = vrot.slane %v236_v58, 1  ;;  %v242_v61 = vrot.slane %v241_v59, 1  ;;  %v250_v62 = vld [vmem:[#allocation0 + $0xb7] ss:$-1 sm:$0xff]  ;;  %224 = vst [vmem:[#allocation1 + $0x48] sm:$0xff] %v223_v56 }
  0x17   :  { %v255_v63 = vld [vmem:[#allocation0 + $0xbf] ss:$-1 sm:$0xff]  ;;  %218 = vst.msk [vmem:[#allocation1 + $0x40] sm:$0xff] %vm105_vm0, %v214_v53  ;;  %v251_v0 = vrot.slane %v250_v62, 1  ;;  %v264_v2 = vld [vmem:[#allocation0 + $0xc7] ss:$-1 sm:$0xff] }
  0x18   :  { %v256_v1 = vrot.slane %v255_v63, 1  ;;  %v269_v3 = vld [vmem:[#allocation0 + $0xcf] ss:$-1 sm:$0xff]  ;;  %232 = vst.msk [vmem:[#allocation1 + $0x48] sm:$0xff] %vm105_vm0, %v228_v57  ;;  %238 = vst [vmem:[#allocation1 + $0x50] sm:$0xff] %v237_v60  ;;  %v265_v4 = vrot.slane %v264_v2, 1 }
  0x19   :  { %v270_v5 = vrot.slane %v269_v3, 1  ;;  %v278_v6 = vld [vmem:[#allocation0 + $0xd7] ss:$-1 sm:$0xff]  ;;  %v283_v7 = vld [vmem:[#allocation0 + $0xdf] ss:$-1 sm:$0xff]  ;;  %246 = vst.msk [vmem:[#allocation1 + $0x50] sm:$0xff] %vm105_vm0, %v242_v61 }
  0x1a   :  { %252 = vst [vmem:[#allocation1 + $0x58] sm:$0xff] %v251_v0  ;;  %v279_v8 = vrot.slane %v278_v6, 1  ;;  %v284_v9 = vrot.slane %v283_v7, 1  ;;  %v292_v11 = vld [vmem:[#allocation0 + $0xe7] ss:$-1 sm:$0xff]  ;;  %266 = vst [vmem:[#allocation1 + $0x60] sm:$0xff] %v265_v4 }
  0x1b   :  { %v297_v12 = vld [vmem:[#allocation0 + $0xef] ss:$-1 sm:$0xff]  ;;  %260 = vst.msk [vmem:[#allocation1 + $0x58] sm:$0xff] %vm105_vm0, %v256_v1  ;;  %v293_v13 = vrot.slane %v292_v11, 1  ;;  %v306_v15 = vld [vmem:[#allocation0 + $0xf7] ss:$-1 sm:$0xff] }
  0x1c   :  { %v298_v14 = vrot.slane %v297_v12, 1  ;;  %v311_v16 = vld [vmem:[#allocation0 + $0xff] ss:$-1 sm:$0xff]  ;;  %274 = vst.msk [vmem:[#allocation1 + $0x60] sm:$0xff] %vm105_vm0, %v270_v5  ;;  %280 = vst [vmem:[#allocation1 + $0x68] sm:$0xff] %v279_v8  ;;  %v307_v17 = vrot.slane %v306_v15, 1 }
  0x1d   :  { %v312_v18 = vrot.slane %v311_v16, 1  ;;  %v374_v19 = vld [vmem:[#allocation1] sm:$0xff]  ;;  %v376_v20 = vld [vmem:[#allocation1 + $0x8] sm:$0xff]  ;;  %v378_v21 = vld [vmem:[#allocation1 + $0x10] sm:$0xff]  ;;  %288 = vst.msk [vmem:[#allocation1 + $0x68] sm:$0xff] %vm105_vm0, %v284_v9 }
  0x1e   :  { %294 = vst [vmem:[#allocation1 + $0x70] sm:$0xff] %v293_v13  ;;  %375 = vst [vmem:[%s605_s1] sm:$0xff] %v374_v19  ;;  %v380_v22 = vld [vmem:[#allocation1 + $0x18] sm:$0xff]  ;;  %v382_v23 = vld [vmem:[#allocation1 + $0x20] sm:$0xff] }
  0x1f   :  { %377 = vst [vmem:[%s605_s1 + $0x8] sm:$0xff] %v376_v20  ;;  %379 = vst [vmem:[%s605_s1 + $0x10] sm:$0xff] %v378_v21  ;;  %v384_v24 = vld [vmem:[#allocation1 + $0x28] sm:$0xff]  ;;  %v386_v25 = vld [vmem:[#allocation1 + $0x30] sm:$0xff] }
  0x20   :  { %302 = vst.msk [vmem:[#allocation1 + $0x70] sm:$0xff] %vm105_vm0, %v298_v14  ;;  %308 = vst [vmem:[#allocation1 + $0x78] sm:$0xff] %v307_v17  ;;  %v388_v26 = vld [vmem:[#allocation1 + $0x38] sm:$0xff]  ;;  %v390_v10 = vld [vmem:[#allocation1 + $0x40] sm:$0xff] }
  0x21   :  { %381 = vst [vmem:[%s605_s1 + $0x18] sm:$0xff] %v380_v22  ;;  %383 = vst [vmem:[%s605_s1 + $0x20] sm:$0xff] %v382_v23  ;;  %v392_v27 = vld [vmem:[#allocation1 + $0x48] sm:$0xff]  ;;  %v394_v28 = vld [vmem:[#allocation1 + $0x50] sm:$0xff] }
  0x22   :  { %385 = vst [vmem:[%s605_s1 + $0x28] sm:$0xff] %v384_v24  ;;  %316 = vst.msk [vmem:[#allocation1 + $0x78] sm:$0xff] %vm105_vm0, %v312_v18  ;;  %v396_v29 = vld [vmem:[#allocation1 + $0x58] sm:$0xff] }
  0x23   :  { %387 = vst [vmem:[%s605_s1 + $0x30] sm:$0xff] %v386_v25  ;;  %389 = vst [vmem:[%s605_s1 + $0x38] sm:$0xff] %v388_v26  ;;  %v398_v30 = vld [vmem:[#allocation1 + $0x60] sm:$0xff] }
  0x24   :  { %391 = vst [vmem:[%s605_s1 + $0x40] sm:$0xff] %v390_v10  ;;  %393 = vst [vmem:[%s605_s1 + $0x48] sm:$0xff] %v392_v27  ;;  %v400_v31 = vld [vmem:[#allocation1 + $0x68] sm:$0xff] }
  0x25   :  { %395 = vst [vmem:[%s605_s1 + $0x50] sm:$0xff] %v394_v28  ;;  %397 = vst [vmem:[%s605_s1 + $0x58] sm:$0xff] %v396_v29 }
  0x26   :  { %399 = vst [vmem:[%s605_s1 + $0x60] sm:$0xff] %v398_v30  ;;  %401 = vst [vmem:[%s605_s1 + $0x68] sm:$0xff] %v400_v31 }
  0x27   :  { %v402_v32 = vld [vmem:[#allocation1 + $0x70] sm:$0xff] }
  0x28   :  { %403 = vst [vmem:[%s605_s1 + $0x70] sm:$0xff] %v402_v32 }
  0x29   :  { %v404_v33 = vld [vmem:[#allocation1 + $0x78] sm:$0xff] }
  0x2a   :  { %405 = vst [vmem:[%s605_s1 + $0x78] sm:$0xff] %v404_v33 }

// kernel: matrix_q_update.7
= control target key start
LH: loop header
LB: loop body
LE: loop exit
PB: predicated region body
PF: predicated region fallthrough
CT: control target
= control target key end

     0   :  { %7 = vsyncpa [#allocation3], 0  ;;  %s1244_s0 = inlined_call_operand.vmem [shape: f32[8,16,16], index: 0, kind: input, shape index: {}]   ;;  %s1245_s1 = inlined_call_operand.vmem [shape: f32[8,16,16], index: 1, kind: input, shape index: {}]   ;;  %s1246_s2 = inlined_call_operand.hbm [shape: f32[8,16,16], index: 2, kind: output, shape index: {}]  }
   0x1   :  { %9 = vsyncpa [#allocation3 + $0x1], 0  ;;  %s1071_s9 = smov 0   ;;  %s1073_s10 = smov 0  }
   0x2   :  { %s1075_s11 = smov 0   ;;  %s1077_s12 = smov 0  }
   0x3 LB: > { %s1092_s13 = sadd.s32 4294967295, %s1051_s12   ;;  %s824_s14 = sadd.s32 4294967294, %s1051_s12   ;;  %s1051_s12 = sphi %s1077_s12, %s1252_s12   ;;  %s1047_s11 = sphi %s1075_s11, %s1251_s11   ;;  %s1043_s10 = sphi %s1073_s10, %s1250_s10   ;;  %s1039_s9 = sphi %s1071_s9, %s1249_s9  }
   0x4   : > { %s1096_s15 = sadd.s32 1, %s1051_s12   ;;  %s74_s16 = sadd.s32 1, %s1047_s11 }
   0x5   : > { %s71_s17 = ssub.s32 %s1051_s12, %s1096_s15  ;;  %p84_p0 = scmp.ne.s32.totalorder %s1047_s11, %s1043_s10 }
   0x6   : > { %p72_p1 = scmp.eq.s32.totalorder %s71_s17, 0  ;;  %p85_p2 = scmp.eq.s32.totalorder %s1092_s13, 1 }
   0x7   : > { %p90_p3 = scmp.ne.s32.totalorder %s1043_s10, %s1039_s9  ;;  %p91_p4 = scmp.eq.s32.totalorder %s824_s14, 1 }
   0x8   : > { %s1107_s18 = scalar_select %p72_p1, %s1047_s11, %s74_s16  }
   0x9   : > { %p1109_p5 = por %p85_p2, %p84_p0  ;;  %p1113_p6 = por %p91_p4, %p90_p3 }
   0xa   : > { %p827_p7 = scmp.ge.s32.totalorder %s1051_s12, 1  ;;  %p129_p8 = scmp.lt.s32.totalorder %s1051_s12, 3 }
   0xc   : > { %p130_p9 = pnand %p827_p7, %p129_p8 }
   0xd   : > { %s829_s21 = sshll.u32 (!%p130_p9), %s1092_s13, 2  ;;  %vm209_vm0 = vcmask (!%p130_p9), 130048   ;;  %s155_s3 = sand.u32 (!%p130_p9), 1, %s1043_s10  }
   0xe   : > { %133 = sbr.rel (%p130_p9) target bundleno = 623 (0x26f), region = 28  ;;  %p159_p10 = scmp.lt.s32.totalorder (!%p130_p9), %s829_s21, 7 }
   0xf   : > { %s828_s5 = sshll.u32 (!%p130_p9), %s155_s3, 6  ;;  %s870_s8 = sshll.u32 (!%p130_p9), %s1092_s13, 10 }
  0x10   : > { %s157_s7 = scalar_lea.vmem (!%p130_p9), [#allocation2], %s828_s5  ;;  %s1203_s13 = scalar_lea.sflag (!%p130_p9), [#allocation3], %s155_s3 }
  0x11   : > { %s750_s14 = sshll.u32 (!%p130_p9), %s157_s7, 4  ;;  %s1053_s23 = smov (!%p130_p9), [#allocation2]   ;;  %s1195_s14 = int_to_ptr.vmem [resolvable:$true] %s750_s14 }
  0x12   : > { %s993_s24 = sshll.u32 (!%p130_p9), %s1053_s23, 4  ;;  %s994_s24 = int_to_ptr.vmem [resolvable:$false] %s993_s24 }
  0x13   : > { %p996_p0 = scmp.lt.s32.totalorder (!%p130_p9), %s1195_s14, %s994_s24 }
  0x15   : > { %s1254_s21 = smov (!%p159_p10, %s829_s21), 7 }
  0x16   : > { %s867_s22 = sshll.u32 %s1254_s21, 4  ;;  %s1193_s21 = scalar_lea.hbm %s1246_s2, %s870_s8 }
  0x17   : > { %s163_s25 = scalar_lea.vmem %s1244_s0, %s867_s22  ;;  %s170_s28 = scalar_lea.vmem %s1245_s1, %s867_s22 }
  0x18   : > { %v837_v0 = vld [vmem:[%s163_s25 + $0x10] sm:$0xff]  ;;  %v173_v1 = vld [vmem:[%s163_s25] sm:$0xff]  ;;  %v838_v2 = vld [vmem:[%s163_s25 + $0x18] sm:$0xff]  ;;  %s989_s22 = scalar_lea.vmem %s1195_s14, 1024 }
  0x19   : > { %318 = vxpose.xlu1.b32.start [1/2] (short) (narrow) %v837_v0, 16  ;;  %177 = vxpose.xlu0.b32.start [1/2] (short) (narrow) %v173_v1, 16  ;;  %v174_v3 = vld [vmem:[%s163_s25 + $0x8] sm:$0xff]  ;;  %v175_v4 = vld [vmem:[%s170_s28] sm:$0xff]  ;;  %v839_v6 = vld [vmem:[%s170_s28 + $0x10] sm:$0xff]  ;;  %p990_p11 = scmp.ne.s32.totalorder %s1195_s14, %s989_s22 }
  0x1a   : > { %v176_v5 = vld [vmem:[%s170_s28 + $0x8] sm:$0xff]  ;;  %v840_v7 = vld [vmem:[%s170_s28 + $0x18] sm:$0xff]  ;;  %v845_v10 = vld [vmem:[%s163_s25 + $0x20] sm:$0xff] }
  0x1b   : > { %v915_v8 = vpack.c.bf16 %v176_v5, %v175_v4  ;;  %v919_v9 = vpack.c.bf16 %v840_v7, %v839_v6  ;;  %v853_v11 = vld [vmem:[%s163_s25 + $0x30] sm:$0xff]  ;;  %v847_v12 = vld [vmem:[%s170_s28 + $0x20] sm:$0xff]  ;;  %v848_v13 = vld [vmem:[%s170_s28 + $0x28] sm:$0xff]  ;;  %p991_p12 = pnand %p990_p11, %p1109_p5 }
  0x1c   : > { %v923_v14 = vpack.c.bf16 %v848_v13, %v847_v12  ;;  %v846_v15 = vld [vmem:[%s163_s25 + $0x28] sm:$0xff]  ;;  %v854_v16 = vld [vmem:[%s163_s25 + $0x38] sm:$0xff]  ;;  %v855_v17 = vld [vmem:[%s170_s28 + $0x30] sm:$0xff]  ;;  %s995_s25 = scalar_lea.vmem %s994_s24, 2048 }
  0x1d   : > { %319 = vxpose.xlu1.b32.end [2/2] (short) (narrow) %v838_v2, 16  ;;  %178 = vxpose.xlu0.b32.end [2/2] (short) (narrow) %v174_v3, 16  ;;  %v856_v18 = vld [vmem:[%s170_s28 + $0x38] sm:$0xff]  ;;  %p992_p13 = pneg %p991_p12  ;;  %p997_p1 = scmp.lt.s32.totalorder %s995_s25, %s989_s22 }
  0x1e   : > { %916 = vmatprep.subr.bf16.mxu0 %v915_v8  ;;  %920 = vmatprep.subr.bf16.mxu1 %v919_v9  ;;  %v927_v19 = vpack.c.bf16 %v856_v18, %v855_v17 }
  0x1f   : > { %918 = vmatpush3.bf16.msra.mxu0 %v915_v8  ;;  %922 = vmatpush3.bf16.msra.mxu1 %v919_v9  ;;  %p998_p2 = por %p997_p1, %p996_p0 }
  0x20   : > { %924 = vmatprep.subr.bf16.mxu0 %v923_v14  ;;  %928 = vmatprep.subr.bf16.mxu1 %v927_v19 }
  0x21   : > { %459 = vxpose.xlu0.b32.start [1/2] (short) (narrow) %v845_v10, 16  ;;  %600 = vxpose.xlu1.b32.start [1/2] (short) (narrow) %v853_v11, 16  ;;  %p999_p3 = pnand %p998_p2, %p992_p13 }
  0x25   : > { %460 = vxpose.xlu0.b32.end [2/2] (short) (narrow) %v846_v15, 16  ;;  %601 = vxpose.xlu1.b32.end [2/2] (short) (narrow) %v854_v16, 16 }
  0x99   : > { %v334_v20 = vpop.trf.xlu1  ;;  %v193_v21 = vpop.trf.xlu0 }
  0x9a   : > { %891 = vmatprep.mubr.msk.f32.mxu0 %vm209_vm0, %v193_v21  ;;  %898 = vmatprep.mubr.msk.f32.mxu1 %vm209_vm0, %v334_v20 }
  0x9d   : > { %v335_v22 = vpop.trf.xlu1  ;;  %v194_v23 = vpop.trf.xlu0 }
  0x9e   : > { %892 = vmatmul.mubr.msk.f32.vlgmr.msra.gmra.mrb[0].mxu0 %vm209_vm0, %v194_v23  ;;  %899 = vmatmul.mubr.msk.f32.vlgmr.msra.gmra.mrb[0].mxu1 %vm209_vm0, %v335_v22 }
  0x9f   : > { %926 = vmatpush3.bf16.msra.mxu0 %v923_v14  ;;  %930 = vmatpush3.bf16.msra.mxu1 %v927_v19 }
  0xa1   : > { %v475_v24 = vpop.trf.xlu0  ;;  %v616_v25 = vpop.trf.xlu1 }
  0xa2   : > { %905 = vmatprep.mubr.msk.f32.mxu0 %vm209_vm0, %v475_v24  ;;  %912 = vmatprep.mubr.msk.f32.mxu1 %vm209_vm0, %v616_v25 }
  0xa5   : > { %v476_v26 = vpop.trf.xlu0  ;;  %v617_v27 = vpop.trf.xlu1 }
  0xa6   : > { %906 = vmatmul.mubr.msk.f32.vlgmr.msra.gmra.mrb[2].mxu0 %vm209_vm0, %v476_v26  ;;  %913 = vmatmul.mubr.msk.f32.vlgmr.msra.gmra.mrb[2].mxu1 %vm209_vm0, %v617_v27 }
 0x171   : > { %v1134_v28 = vpop.f32.mrb[0].mxu0  ;;  %v1136_v29 = vpop.f32.mrb[0].mxu1 }
 0x172   : > { %v292_v30 = vmul.f32 %v1134_v28, %v1134_v28  ;;  %v432_v31 = vmul.f32 %v1136_v29, %v1136_v29  ;;  %v1142_v32 = vpop.f32.mrb[1].mxu0  ;;  %v1144_v33 = vpop.f32.mrb[1].mxu1 }
 0x173   : > { %v291_v34 = vmul.f32 %v1142_v32, %v1142_v32  ;;  %v431_v35 = vmul.f32 %v1144_v33, %v1144_v33 }
 0x174   : > { %v434_v36 = vsel %vm209_vm0, %v432_v31, 0.0  ;;  %v294_v37 = vsel %vm209_vm0, %v292_v30, 0.0 }
 0x175   : > { %v433_v38 = vsel %vm209_vm0, %v431_v35, 0.0  ;;  %v293_v39 = vsel %vm209_vm0, %v291_v34, 0.0 }
 0x176   : > { %v435_v40 = vadd.f32 %v434_v36, %v433_v38  ;;  %v295_v41 = vadd.f32 %v294_v37, %v293_v39 }
 0x178   : > { %436 = vadd.xlane.f32.xlu1 %v435_v40  ;;  %296 = vadd.xlane.f32.xlu0 %v295_v41 }
 0x179   : > { %v1154_v42 = vpop.f32.mrb[2].mxu0  ;;  %v1156_v43 = vpop.f32.mrb[2].mxu1 }
 0x17a   : > { %v573_v44 = vmul.f32 %v1154_v42, %v1154_v42  ;;  %v1160_v45 = vpop.f32.mrb[3].mxu0  ;;  %v714_v46 = vmul.f32 %v1156_v43, %v1156_v43  ;;  %v1164_v47 = vpop.f32.mrb[3].mxu1 }
 0x17b   : > { %v572_v48 = vmul.f32 %v1160_v45, %v1160_v45  ;;  %v713_v49 = vmul.f32 %v1164_v47, %v1164_v47 }
 0x17c   : > { %v575_v50 = vsel %vm209_vm0, %v573_v44, 0.0  ;;  %v716_v51 = vsel %vm209_vm0, %v714_v46, 0.0 }
 0x17d   : > { %v574_v52 = vsel %vm209_vm0, %v572_v48, 0.0  ;;  %v715_v53 = vsel %vm209_vm0, %v713_v49, 0.0 }
 0x17e   : > { %v576_v54 = vadd.f32 %v575_v50, %v574_v52  ;;  %v717_v55 = vadd.f32 %v716_v51, %v715_v53 }
 0x180   : > { %577 = vadd.xlane.f32.xlu1 %v576_v54 }
 0x184   : > { %718 = vadd.xlane.f32.xlu1 %v717_v55 }
 0x205   : > { %v437_v56 = vpop.xlane.xlu1 %436  ;;  %v297_v57 = vpop.xlane.xlu0 %296 }
 0x206   : > { %v438_v58 = vrot.slane %v437_v56, 4  ;;  %v298_v59 = vrot.slane %v297_v57, 4 }
 0x208   : > { %v439_v60 = vadd.f32 %v438_v58, %v437_v56  ;;  %v299_v61 = vadd.f32 %v298_v59, %v297_v57 }
 0x20a   : > { %v440_v62 = vrot.slane %v439_v60, 2  ;;  %v300_v63 = vrot.slane %v299_v61, 2 }
 0x20c   : > { %v301_v0 = vadd.f32 %v300_v63, %v299_v61  ;;  %v441_v1 = vadd.f32 %v440_v62, %v439_v60 }
 0x20d   : > { %v578_v2 = vpop.xlane.xlu1 %577 }
 0x20e   : > { %v579_v3 = vrot.slane %v578_v2, 4  ;;  %v302_v4 = vrot.slane %v301_v0, 1  ;;  %v442_v5 = vrot.slane %v441_v1, 1 }
 0x210   : > { %v580_v6 = vadd.f32 %v579_v3, %v578_v2  ;;  %v303_v7 = vadd.f32 %v302_v4, %v301_v0  ;;  %v443_v8 = vadd.f32 %v442_v5, %v441_v1 }
 0x211   : > { %v719_v9 = vpop.xlane.xlu1 %718 }
 0x212   : > { %v581_v10 = vrot.slane %v580_v6, 2  ;;  %v720_v11 = vrot.slane %v719_v9, 4  ;;  %931 = vpush %v303_v7 }
 0x213   : > { %933 = vpush %v443_v8 }
 0x214   : > { %v721_v12 = vadd.f32 %v720_v11, %v719_v9  ;;  %v582_v13 = vadd.f32 %v581_v10, %v580_v6 }
 0x216   : > { %v722_v14 = vrot.slane %v721_v12, 2  ;;  %v583_v15 = vrot.slane %v582_v13, 1 }
 0x218   : > { %v723_v16 = vadd.f32 %v722_v14, %v721_v12  ;;  %v584_v17 = vadd.f32 %v583_v15, %v582_v13 }
 0x21a   : > { %935 = vpush %v584_v17  ;;  %v724_v18 = vrot.slane %v723_v16, 1 }
 0x21c   : > { %v725_v19 = vadd.f32 %v724_v18, %v723_v16 }
 0x21e   : > { %937 = vpush %v725_v19 }
 0x243   : > { %s932_s29 = spop %931 }
 0x244   : > { %v305_v20 = vstv %s932_s29  ;;  %s934_s30 = spop %933 }
 0x245   : > { %v306_v21 = vmax.f32 %v305_v20, 1e-24  ;;  %v445_v22 = vstv %s934_s30 }
 0x246   : > { %v446_v23 = vmax.f32 %v445_v22, 1e-24 }
 0x247   : > { %981 = vrsqrt.f32 %v306_v21 }
 0x248   : > { %983 = vrsqrt.f32 %v446_v23 }
 0x24b   : > { %s936_s4 = spop %935 }
 0x24c   : > { %v586_v24 = vstv %s936_s4 }
 0x24d   : > { %v587_v25 = vmax.f32 %v586_v24, 1e-24 }
 0x24f   : > { %985 = vrsqrt.f32 %v587_v25  ;;  %s938_s6 = spop %937 }
 0x250   : > { %v727_v26 = vstv %s938_s6 }
 0x251   : > { %v982_v27 = vpop.eup %981  ;;  %v728_v30 = vmax.f32 %v727_v26, 1e-24 }
 0x252   : > { %v984_v31 = vpop.eup %983  ;;  %v308_v34 = vmul.f32 %v982_v27, %v1142_v32  ;;  %v309_v35 = vmul.f32 %v982_v27, %v1134_v28 }
 0x253   : > { %v448_v36 = vmul.f32 %v984_v31, %v1144_v33  ;;  %v449_v37 = vmul.f32 %v984_v31, %v1136_v29  ;;  %987 = vrsqrt.f32 %v728_v30 }
 0x254   : > { %310 = vst.msk [vmem:[%s157_s7] sm:$0xff] %vm209_vm0, %v308_v34  ;;  %311 = vst.msk [vmem:[%s157_s7 + $0x8] sm:$0xff] %vm209_vm0, %v309_v35 }
 0x255   : > { %843 = vst.msk [vmem:[%s157_s7 + $0x10] sm:$0xff] %vm209_vm0, %v448_v36  ;;  %844 = vst.msk [vmem:[%s157_s7 + $0x18] sm:$0xff] %vm209_vm0, %v449_v37 }
 0x259   : > { %v986_v38 = vpop.eup %985 }
 0x25a   : > { %v589_v32 = vmul.f32 %v986_v38, %v1160_v45  ;;  %v590_v28 = vmul.f32 %v986_v38, %v1154_v42 }
 0x25c   : > { %851 = vst.msk [vmem:[%s157_s7 + $0x20] sm:$0xff] %vm209_vm0, %v589_v32  ;;  %852 = vst.msk [vmem:[%s157_s7 + $0x28] sm:$0xff] %vm209_vm0, %v590_v28 }
 0x25d   : > { %v988_v29 = vpop.eup %987 }
 0x25e   : > { %v730_v33 = vmul.f32 %v988_v29, %v1164_v47  ;;  %v731_v39 = vmul.f32 %v988_v29, %v1156_v43 }
 0x260   : > { %859 = vst.msk [vmem:[%s157_s7 + $0x30] sm:$0xff] %vm209_vm0, %v730_v33  ;;  %860 = vst.msk [vmem:[%s157_s7 + $0x38] sm:$0xff] %vm209_vm0, %v731_v39 }
 0x261   : > { %1002 = shalt.err (!%p999_p3)
}
 0x262   : > { %s1003_s26 = scalar_lea.hbm %s1193_s21, 1024  ;;  %s1007_s29 = scalar_lea.hbm %s1246_s2, 2048 }
 0x263   : > { %p1004_p4 = scmp.ne.s32.totalorder %s1193_s21, %s1003_s26  ;;  %p1008_p9 = scmp.lt.u32.totalorder %s1193_s21, %s1246_s2 }
 0x264   : > { %p1009_p10 = scmp.lt.u32.totalorder %s1007_s29, %s1003_s26  ;;  %p1011_p12 = scmp.lt.u32.totalorder %s1003_s26, %s1193_s21 }
 0x265   : > { %p1005_p7 = pnand %p1004_p4, %p1109_p5 }
 0x266   : > { %p1010_p11 = por %p1009_p10, %p1008_p9 }
 0x267   : > { %p1006_p8 = pneg %p1005_p7 }
 0x268   : > { %p1012_p13 = por %p1011_p12, %p1010_p11 }
 0x26a   : > { %p1013_p0 = pnand %p1012_p13, %p1006_p8 }
 0x26c   : > { %1016 = shalt.err (!%p1013_p0)
}
 0x26d   : > { %s1054_s4 = smov 128   ;;  %s1055_s5 = smov 8  }
 0x26e   : > { %939 = dma.vmem_to_hbm [thread:$0]  (%p1109_p5), %s1195_s14, 1024, %s1193_s21, %s1203_s13, %s1054_s4, %s1054_s4, %s1055_s5  }
 0x26f PF: > { %p945_p1 = scmp.ge.s32.totalorder %s1051_s12, 2  ;;  %s765_s6 = sand.u32 1, %s1039_s9  }
 0x270   : > { %s766_s7 = scalar_lea.sflag [#allocation3], %s765_s6 }
 0x271   : > { %p942_p2 = pnand %p945_p1, %p1113_p6 }
 0x273   : > { %1034 = dma.done.wait (!%p942_p2), %s766_s7, 1024  }
 0x274   : > { %1036 = vsyncadd (!%p942_p2), %s766_s7, 4294966272  ;;  %p12_p3 = scmp.ge.s32.totalorder %s1096_s15, 4   ;;  %s1249_s9 = smov %s1043_s10 }
 0x275   : > { %s1250_s10 = smov %s1047_s11  ;;  %s1251_s11 = smov %s1107_s18 }
 0x276   : > { %s1252_s12 = smov %s1096_s15  ;;  %14 = sbr.rel (!%p12_p3) target bundleno = 3 (0x3), region = 75 }
 0x27d   :  { %771 = vsyncpa [#allocation3], 1 }
 0x27e   :  { %773 = vsyncpa [#allocation3 + $0x1], 1 }

// kernel: matrix_q_update.6
= control target key start
LH: loop header
LB: loop body
LE: loop exit
PB: predicated region body
PF: predicated region fallthrough
CT: control target
= control target key end

     0   :  { %s1227_s30 = smov 0   ;;  %s1490_s0 = inlined_call_operand.vmem [shape: f32[2,8,256], index: 0, kind: input, shape index: {}]   ;;  %s1491_s1 = inlined_call_operand.vmem [shape: f32[2,8,256], index: 1, kind: input, shape index: {}]   ;;  %s1492_s2 = inlined_call_operand.vmem [shape: f32[9,256], index: 2, kind: input, shape index: {}]   ;;  %s1493_s3 = inlined_call_operand.vmem [shape: f32[2,8], index: 3, kind: input, shape index: {}]   ;;  %s1494_s4 = inlined_call_operand.vmem [shape: f32[2,1], index: 4, kind: input, shape index: {}]   ;;  %s1495_s5 = inlined_call_operand.vmem [shape: f32[8,2], index: 5, kind: input, shape index: {}]   ;;  %s1496_s6 = inlined_call_operand.vmem [shape: f32[8,1], index: 6, kind: input, shape index: {}]   ;;  %s1497_s7 = inlined_call_operand.vmem [shape: f32[8,72], index: 7, kind: input, shape index: {}]   ;;  %s1498_s8 = inlined_call_operand.vmem [shape: f32[8,72], index: 8, kind: input, shape index: {}]   ;;  %s1499_s9 = inlined_call_operand.vmem [shape: f32[2,8,256], index: 9, kind: output, shape index: {}]  }
   0x1 LB: > { %s1065_s10 = sadd.s32 4294967295, %s1165_s30   ;;  %p1069_p0 = scmp.ge.s32.totalorder %s1165_s30, 1  ;;  %s1165_s30 = sphi %s1227_s30, %s19_s30  }
   0x2   : > { %p297_p1 = scmp.lt.s32.totalorder %s1165_s30, 3 }
   0x4   : > { %p298_p2 = pnand %p1069_p0, %p297_p1 }
   0x5   : > { %p338_p3 = scmp.lt.s32.totalorder (!%p298_p2), %s1065_s10, 1  ;;  %v1167_v3 = vmov (!%p298_p2), 0.0   ;;  %v1168_v4 = vmov (!%p298_p2), 0   ;;  %v367_v5 = vld [vmem:[%s1494_s4] sm:$0x3] (!%p298_p2)  ;;  %vm373_vm0 = vcmask (!%p298_p2), 64512   ;;  %v566_v37 = vlaneseq (!%p298_p2) }
   0x6   : > { %301 = sbr.rel (%p298_p2) target bundleno = 1418 (0x58a), region = 56  ;;  %441 = vmatprep.mubr.f32.mxu0 (!%p298_p2), %v1167_v3  ;;  %532 = vmatprep.mubr.f32.mxu1 (!%p298_p2), %v1167_v3  ;;  %v366_v8 = vld [vmem:[%s1493_s3] sm:$0x3] (!%p298_p2)  ;;  %vm461_vm1 = vcmask (!%p298_p2), 1041408   ;;  %vm457_vm2 = vcmask (!%p298_p2), 15360   ;;  %s1169_s23 = smov (!%p298_p2), 17  }
   0x7   : > { %1141 = vset.pattern.permute.xlu0 (!%p298_p2), %v1168_v4  ;;  %1142 = vset.pattern.permute.xlu1 (!%p298_p2), %v1168_v4  ;;  %v451_v9 = vld [vmem:[%s1496_s6] sm:$0xff] (!%p298_p2)  ;;  %s1170_s24 = smov (!%p298_p2), 113   ;;  %s1171_s25 = smov (!%p298_p2), 16   ;;  %v1299_v39 = vshrl.u32 (!%p298_p2), %v566_v37, 7  ;;  %vm561_vm3 = vcmask (!%p298_p2), 138240   ;;  %v1313_v45 = vld [vmem:[%s1492_s2 + $0x8] sm:$0xff] (!%p298_p2) }
   0x8   : > { %454 = vperm.xlu1 (!%p298_p2), %1142, %v451_v9   ;;  %v450_v17 = vld [vmem:[%s1495_s5] sm:$0xff] (!%p298_p2)  ;;  %s1172_s26 = smov (!%p298_p2), 112   ;;  %s1173_s27 = smov (!%p298_p2), 15   ;;  %vm581_vm4 = vcmask (!%p298_p2), 130048   ;;  %vm601_vm5 = vcmask (!%p298_p2), 121856   ;;  %vm621_vm6 = vcmask (!%p298_p2), 7168  }
   0x9   : > { %s1174_s28 = smov (!%p298_p2), 111   ;;  %s1175_s29 = smov (!%p298_p2), 1   ;;  %v568_v41 = vsub.s32 (!%p298_p2), 0, %v1299_v39  ;;  %v588_v42 = vsub.s32 (!%p298_p2), 1, %v1299_v39  ;;  %v1308_v43 = vld [vmem:[%s1492_s2] sm:$0xff] (!%p298_p2)  ;;  %v608_v55 = vsub.s32 (!%p298_p2), 2, %v1299_v39 }
   0xa   : > { %v628_v56 = vsub.s32 (!%p298_p2), 3, %v1299_v39  ;;  %v638_v61 = vsub.s32 (!%p298_p2), 4, %v1299_v39  ;;  %vm650_vm7 = vcmask (!%p298_p2), 1039360   ;;  %vm670_vm8 = vcmask (!%p298_p2), 924672  }
   0xb   : > { %v1316_v46 = vrot.slane (!%p298_p2), %v1308_v43, %v568_v41  ;;  %v1319_v47 = vrot.slane (!%p298_p2), %v1313_v45, %v568_v41  ;;  %v1322_v48 = vrot.slane (!%p298_p2), %v1308_v43, %v588_v42  ;;  %v1325_v49 = vrot.slane (!%p298_p2), %v1313_v45, %v588_v42 }
   0xc   : > { %v1340_v4 = vrot.slane (!%p298_p2), %v1308_v43, %v608_v55  ;;  %vm690_vm9 = vcmask (!%p298_p2), 916480   ;;  %vm710_vm10 = vcmask (!%p298_p2), 908288   ;;  %vm726_vm11 = vcmask (!%p298_p2), 588800  }
   0xd   : > { %s1501_s10 = smov (!%p338_p3, %s1065_s10), 1 }
   0xe   : > { %s1235_s11 = sshll.u32 %s1501_s10, 4  ;;  %s1176_s10 = smov 127  }
   0xf   : > { %s342_s14 = scalar_lea.vmem %s1490_s0, %s1235_s11 }
  0x10   : > { %v1241_v0 = vld [vmem:[%s342_s14] sm:$0xff]  ;;  %v1243_v1 = vld [vmem:[%s342_s14 + $0x8] sm:$0xff] }
  0x11   : > { %v361_v2 = vadd.f32 %v1243_v1, %v1241_v0 }
  0x13   : > { %362 = vadd.xlane.f32.xlu0 %v361_v2 }
  0x29   : > { %370 = vperm.xlu0 %1141, %v367_v5   ;;  %v1343_v5 = vrot.slane %v1313_v45, %v608_v55 }
  0x87   : > { %v455_v18 = vpop.permute.xlu1 %454 }
  0xa0   : > { %v363_v6 = vpop.xlane.xlu0 %362 }
  0xa1   : > { %v365_v7 = vmul.f32 0.00390625, %v363_v6  ;;  %v1346_v6 = vrot.slane %v1308_v43, %v628_v56 }
  0xa3   : > { %377 = vmatprep.subr.mxu0 %v365_v7 }
  0xa4   : > { %378 = vmatpush1.msra.mxu0 %v365_v7  ;;  %v1349_v7 = vrot.slane %v1313_v45, %v628_v56 }
  0xa5   : > { %1076 = vmatmul.mubr.msk.f32.vlgmr.msra.gmra.mrb[0].mxu0 %vm373_vm0, %v366_v8 }
  0xa6   : > { %794 = vmatprep.mubr.f32.mxu0 %v1167_v3 }
  0xa8   : > { %v371_v10 = vpop.permute.xlu0 %370 }
 0x178   : > { %v443_v11 = vpop.f32.mrb[0].mxu0 }
 0x179   : > { %v444_v12 = vadd.f32 %v443_v11, %v371_v10  ;;  %v445_v13 = vpop.f32.mrb[1].mxu0  ;;  %v1357_v11 = vrot.slane %v1313_v45, %v638_v61 }
 0x17a   : > { %v446_v14 = vadd.f32 %v445_v13, %v371_v10  ;;  %v1354_v10 = vrot.slane %v1308_v43, %v638_v61  ;;  %v678_v13 = vsub.s32 6, %v1299_v39 }
 0x17b   : > { %v448_v16 = vmax.f32 %v444_v12, 0.0 }
 0x17c   : > { %v449_v15 = vmax.f32 %v446_v14, 0.0 }
 0x17e   : > { %1077 = vmatprep.subr.msk.mxu1 %vm461_vm1, %v449_v15 }
 0x17f   : > { %1078 = vmatpush1.msk.msra.mxu1 %vm461_vm1, %v448_v16 }
 0x180   : > { %1079 = vmatmul.mubr.msk.f32.vlgmr.msra.gmra.mrb[0].mxu1 %vm457_vm2, %v450_v17 }
 0x181   : > { %963 = vmatprep.mubr.f32.mxu1 %v1167_v3  ;;  %v658_v3 = vsub.s32 5, %v1299_v39 }
 0x183   : > { %v1361_v15 = vrot.slane %v1308_v43, %v658_v3 }
 0x253   : > { %v534_v19 = vpop.f32.mrb[0].mxu1 }
 0x254   : > { %v535_v20 = vadd.f32 %v534_v19, %v455_v18  ;;  %v536_v21 = vpop.f32.mrb[1].mxu1  ;;  %v698_v19 = vsub.s32 7, %v1299_v39 }
 0x255   : > { %v537_v22 = vadd.f32 %v536_v21, %v455_v18  ;;  %v1366_v18 = vrot.slane %v1313_v45, %v658_v3 }
 0x256   : > { %v1080_v23 = vmul.f32 -1.442695, %v535_v20  ;;  %v1393_v37 = vrot.slane %v1313_v45, %v698_v19 }
 0x257   : > { %v1081_v24 = vmul.f32 -1.442695, %v537_v22 }
 0x258   : > { %1143 = vpow2.f32 %v1080_v23 }
 0x259   : > { %1145 = vpow2.f32 %v1081_v24 }
 0x262   : > { %v1144_v25 = vpop.eup %1143 }
 0x263   : > { %v1146_v26 = vpop.eup %1145  ;;  %v545_v27 = vadd.f32 1.0, %v1144_v25 }
 0x264   : > { %v546_v28 = vadd.f32 1.0, %v1146_v26  ;;  %v1378_v26 = vrot.slane %v1308_v43, %v678_v13 }
 0x265   : > { %1147 = vrcp.f32 %v545_v27 }
 0x266   : > { %1149 = vrcp.f32 %v546_v28 }
 0x26f   : > { %v1148_v29 = vpop.eup %1147 }
 0x270   : > { %v1150_v30 = vpop.eup %1149  ;;  %v1260_v31 = vmul.f32 %v1148_v29, %v1241_v0 }
 0x271   : > { %v1263_v32 = vmul.f32 %v1150_v30, %v1243_v1  ;;  %v1381_v30 = vrot.slane %v1313_v45, %v678_v13 }
 0x272   : > { %559 = vrot.lane.b32.xlu1 %v1260_v31, %s1169_s23  ;;  %v644_v24 = vmul.f32 %v1354_v10, %v1260_v31 }
 0x273   : > { %668 = vrot.lane.b32.xlu0 %v1263_v32, %s1170_s24  ;;  %v645_v25 = vmul.f32 %v1357_v11, %v1263_v32 }
 0x276   : > { %579 = vrot.lane.b32.xlu1 %v1260_v31, %s1171_s25 }
 0x277   : > { %688 = vrot.lane.b32.xlu0 %v1263_v32, %s1172_s26 }
 0x27a   : > { %599 = vrot.lane.b32.xlu1 %v1260_v31, %s1173_s27 }
 0x27b   : > { %708 = vrot.lane.b32.xlu0 %v1263_v32, %s1174_s28 }
 0x27e   : > { %619 = vrot.lane.b32.xlu1 %v1260_v31, %s1175_s29 }
 0x282   : > { %646 = vrot.lane.b32.xlu1 %v1260_v31, %s1176_s10 }
 0x286   : > { %666 = vrot.lane.b32.xlu1 %v1260_v31, %s1170_s24 }
 0x28a   : > { %555 = vrot.lane.b32.xlu1 %v1263_v32, %s1169_s23 }
 0x28e   : > { %576 = vrot.lane.b32.xlu1 %v1263_v32, %s1171_s25 }
 0x292   : > { %596 = vrot.lane.b32.xlu1 %v1263_v32, %s1173_s27 }
 0x296   : > { %616 = vrot.lane.b32.xlu1 %v1263_v32, %s1175_s29 }
 0x29a   : > { %648 = vrot.lane.b32.xlu1 %v1263_v32, %s1176_s10 }
 0x29e   : > { %686 = vrot.lane.b32.xlu1 %v1260_v31, %s1172_s26 }
 0x2a2   : > { %706 = vrot.lane.b32.xlu1 %v1260_v31, %s1174_s28 }
 0x2e4   : > { %v560_v33 = vpop.permute.xlu1 %559 }
 0x2e5   : > { %v669_v12 = vpop.permute.xlu0 %668 }
 0x2e8   : > { %v580_v34 = vpop.permute.xlu1 %579 }
 0x2e9   : > { %v689_v31 = vpop.permute.xlu0 %688 }
 0x2ec   : > { %v600_v35 = vpop.permute.xlu1 %599 }
 0x2f0   : > { %v620_v36 = vpop.permute.xlu1 %619 }
 0x2f4   : > { %v1297_v38 = vpop.permute.xlu1 %646 }
 0x2f8   : > { %v1301_v40 = vpop.permute.xlu1 %666 }
 0x2f9   : > { %v671_v39 = vsel %vm670_vm8, %v1301_v40, %v669_v12  ;;  %v675_v41 = vsel %vm670_vm8, %v669_v12, %v1301_v40  ;;  %v1408_v40 = vld [vmem:[%s1492_s2 + $0x18] ss:$0 sm:$0xff] }
 0x2fa   : > { %v685_v45 = vmul.f32 %v1381_v30, %v675_v41 }
 0x2fc   : > { %v556_v44 = vpop.permute.xlu1 %555 }
 0x2fd   : > { %v562_v50 = vsel %vm561_vm3, %v560_v33, %v556_v44  ;;  %v565_v51 = vsel %vm561_vm3, %v556_v44, %v560_v33 }
 0x2fe   : > { %v574_v57 = vmul.f32 %v1316_v46, %v565_v51  ;;  %v575_v58 = vmul.f32 %v1319_v47, %v562_v50 }
 0x300   : > { %v577_v52 = vpop.permute.xlu1 %576 }
 0x301   : > { %v582_v53 = vsel %vm581_vm4, %v580_v34, %v577_v52  ;;  %v585_v54 = vsel %vm581_vm4, %v577_v52, %v580_v34 }
 0x302   : > { %v594_v59 = vmul.f32 %v1322_v48, %v585_v54  ;;  %v595_v60 = vmul.f32 %v1325_v49, %v582_v53  ;;  %v709_v54 = vpop.permute.xlu0 %708 }
 0x304   : > { %v1093_v62 = vpack.c.bf16 %v594_v59, %v574_v57  ;;  %v597_v63 = vpop.permute.xlu1 %596  ;;  %v1091_v2 = vpack.c.bf16 %v595_v60, %v575_v58  ;;  %v1414_v59 = vld [vmem:[%s1492_s2 + $0x10] ss:$0 sm:$0xff] }
 0x305   : > { %v602_v8 = vsel %vm601_vm5, %v600_v35, %v597_v63  ;;  %v605_v9 = vsel %vm601_vm5, %v597_v63, %v600_v35  ;;  %v553_v63 = vld [vmem:[%s1497_s7] sm:$0xff] }
 0x306   : > { %1092 = vmatprep.subr.bf16.mxu0 %v1091_v2  ;;  %v614_v20 = vmul.f32 %v1340_v4, %v605_v9  ;;  %v615_v21 = vmul.f32 %v1343_v5, %v602_v8 }
 0x307   : > { %1094 = vmatpush1.bf16.msra.mxu0 %v1093_v62 }
 0x308   : > { %v617_v14 = vpop.permute.xlu1 %616 }
 0x309   : > { %v622_v16 = vsel %vm621_vm6, %v620_v36, %v617_v14  ;;  %v625_v17 = vsel %vm621_vm6, %v617_v14, %v620_v36  ;;  %v1390_v36 = vrot.slane %v1308_v43, %v698_v19  ;;  %v684_v43 = vmul.f32 %v1378_v26, %v671_v39 }
 0x30a   : > { %v634_v22 = vmul.f32 %v1346_v6, %v625_v17  ;;  %v635_v23 = vmul.f32 %v1349_v7, %v622_v16 }
 0x30c   : > { %v1097_v27 = vpack.c.bf16 %v634_v22, %v614_v20  ;;  %v649_v28 = vpop.permute.xlu1 %648  ;;  %v1095_v29 = vpack.c.bf16 %v635_v23, %v615_v21 }
 0x30d   : > { %v651_v33 = vsel %vm650_vm7, %v1297_v38, %v649_v28  ;;  %v655_v34 = vsel %vm650_vm7, %v649_v28, %v1297_v38 }
 0x30e   : > { %v664_v32 = vmul.f32 %v1361_v15, %v651_v33  ;;  %v665_v35 = vmul.f32 %v1366_v18, %v655_v34  ;;  %1096 = vmatprep.subr.bf16.mxu0 %v1095_v29 }
 0x30f   : > { %1098 = vmatpush1.bf16.msra.mxu0 %v1097_v27 }
 0x310   : > { %v1101_v38 = vpack.c.bf16 %v664_v32, %v644_v24  ;;  %v687_v42 = vpop.permute.xlu1 %686  ;;  %v1099_v44 = vpack.c.bf16 %v665_v35, %v645_v25 }
 0x311   : > { %v691_v50 = vsel %vm690_vm9, %v687_v42, %v689_v31  ;;  %v695_v51 = vsel %vm690_vm9, %v689_v31, %v687_v42 }
 0x312   : > { %v704_v52 = vmul.f32 %v1390_v36, %v691_v50  ;;  %v705_v53 = vmul.f32 %v1393_v37, %v695_v51  ;;  %1100 = vmatprep.subr.bf16.mxu0 %v1099_v44 }
 0x313   : > { %1102 = vmatpush1.bf16.msra.mxu0 %v1101_v38 }
 0x314   : > { %v1105_v55 = vpack.c.bf16 %v704_v52, %v684_v43  ;;  %v707_v56 = vpop.permute.xlu1 %706  ;;  %v1103_v57 = vpack.c.bf16 %v705_v53, %v685_v45 }
 0x315   : > { %v715_v58 = vsel %vm710_vm10, %v709_v54, %v707_v56  ;;  %v711_v60 = vsel %vm710_vm10, %v707_v56, %v709_v54 }
 0x316   : > { %v725_v61 = vmul.f32 %v1408_v40, %v715_v58  ;;  %1104 = vmatprep.subr.bf16.mxu0 %v1103_v57  ;;  %v724_v62 = vmul.f32 %v1414_v59, %v711_v60 }
 0x317   : > { %1106 = vmatpush1.bf16.msra.mxu0 %v1105_v55 }
 0x318   : > { %746 = vmatprep.subr.mxu0 %v725_v61 }
 0x31b   : > { %747 = vmatpush1.msra.mxu0 %v724_v62 }
 0x31c   : > { %1084 = vmatmul.mubr.msk.f32.vlgmr.msra.gmra.mrb[2].mxu0 %vm726_vm11, %v553_v63 }
 0x3ef   : > { %v796_v2 = vpop.f32.mrb[2].mxu0 }
 0x3f0   : > { %v801_v3 = vmax.f32 %v796_v2, 0.0  ;;  %v798_v8 = vpop.f32.mrb[3].mxu0 }
 0x3f1   : > { %v802_v9 = vmax.f32 %v798_v8, 0.0 }
 0x3f2   : > { %852 = vrot.lane.b32.xlu1 %v801_v3, %s1176_s10  ;;  %809 = vrot.lane.b32.xlu0 %v801_v3, %s1169_s23  ;;  %v850_v55 = vmul.f32 %v801_v3, %v1354_v10 }
 0x3f6   : > { %820 = vrot.lane.b32.xlu0 %v801_v3, %s1171_s25  ;;  %805 = vrot.lane.b32.xlu1 %v802_v9, %s1169_s23 }
 0x3fa   : > { %831 = vrot.lane.b32.xlu0 %v801_v3, %s1173_s27  ;;  %817 = vrot.lane.b32.xlu1 %v802_v9, %s1171_s25 }
 0x3fe   : > { %842 = vrot.lane.b32.xlu0 %v801_v3, %s1175_s29  ;;  %828 = vrot.lane.b32.xlu1 %v802_v9, %s1173_s27 }
 0x402   : > { %854 = vrot.lane.b32.xlu0 %v802_v9, %s1176_s10  ;;  %839 = vrot.lane.b32.xlu1 %v802_v9, %s1175_s29  ;;  %s352_s29 = scalar_lea.vmem %s1499_s9, %s1235_s11 }
 0x406   : > { %865 = vrot.lane.b32.xlu0 %v802_v9, %s1170_s24  ;;  %863 = vrot.lane.b32.xlu1 %v801_v3, %s1170_s24 }
 0x40a   : > { %876 = vrot.lane.b32.xlu0 %v802_v9, %s1172_s26  ;;  %874 = vrot.lane.b32.xlu1 %v801_v3, %s1172_s26  ;;  %s347_s26 = scalar_lea.vmem %s1491_s1, %s1235_s11 }
 0x40e   : > { %887 = vrot.lane.b32.xlu0 %v802_v9, %s1174_s28  ;;  %885 = vrot.lane.b32.xlu1 %v801_v3, %s1174_s28 }
 0x464   : > { %v853_v12 = vpop.permute.xlu1 %852  ;;  %v810_v13 = vpop.permute.xlu0 %809 }
 0x468   : > { %v821_v14 = vpop.permute.xlu0 %820  ;;  %v806_v16 = vpop.permute.xlu1 %805 }
 0x469   : > { %v811_v17 = vsel %vm561_vm3, %v810_v13, %v806_v16  ;;  %v814_v19 = vsel %vm561_vm3, %v806_v16, %v810_v13 }
 0x46a   : > { %v815_v24 = vmul.f32 %v814_v19, %v1316_v46  ;;  %v816_v25 = vmul.f32 %v811_v17, %v1319_v47 }
 0x46c   : > { %v832_v20 = vpop.permute.xlu0 %831  ;;  %v818_v21 = vpop.permute.xlu1 %817 }
 0x46d   : > { %v822_v22 = vsel %vm581_vm4, %v821_v14, %v818_v21  ;;  %v825_v23 = vsel %vm581_vm4, %v818_v21, %v821_v14 }
 0x46e   : > { %v826_v27 = vmul.f32 %v825_v23, %v1322_v48  ;;  %v827_v28 = vmul.f32 %v822_v22, %v1325_v49 }
 0x470   : > { %v1109_v29 = vpack.c.bf16 %v826_v27, %v815_v24  ;;  %v843_v33 = vpop.permute.xlu0 %842  ;;  %v829_v34 = vpop.permute.xlu1 %828  ;;  %v1107_v31 = vpack.c.bf16 %v827_v28, %v816_v25  ;;  %v355_v28 = vld [vmem:[%s347_s26] sm:$0xff] }
 0x471   : > { %v836_v32 = vsel %vm601_vm5, %v829_v34, %v832_v20  ;;  %v833_v35 = vsel %vm601_vm5, %v832_v20, %v829_v34 }
 0x472   : > { %1108 = vmatprep.subr.bf16.mxu1 %v1107_v31  ;;  %v837_v39 = vmul.f32 %v836_v32, %v1340_v4  ;;  %v838_v47 = vmul.f32 %v833_v35, %v1343_v5  ;;  %v851_v5 = vmul.f32 %v802_v9, %v1357_v11 }
 0x473   : > { %1110 = vmatpush1.bf16.msra.mxu1 %v1109_v29  ;;  %v356_v29 = vld [vmem:[%s347_s26 + $0x8] sm:$0xff] }
 0x474   : > { %v855_v41 = vpop.permute.xlu0 %854  ;;  %v840_v46 = vpop.permute.xlu1 %839 }
 0x475   : > { %v860_v48 = vsel %vm650_vm7, %v855_v41, %v853_v12  ;;  %v844_v49 = vsel %vm621_vm6, %v843_v33, %v840_v46  ;;  %v847_v38 = vsel %vm621_vm6, %v840_v46, %v843_v33  ;;  %v856_v42 = vsel %vm650_vm7, %v853_v12, %v855_v41 }
 0x476   : > { %v862_v44 = vmul.f32 %v860_v48, %v1366_v18  ;;  %v848_v50 = vmul.f32 %v847_v38, %v1346_v6  ;;  %v849_v51 = vmul.f32 %v844_v49, %v1349_v7  ;;  %v861_v53 = vmul.f32 %v856_v42, %v1361_v15 }
 0x478   : > { %v1113_v43 = vpack.c.bf16 %v848_v50, %v837_v39  ;;  %v866_v4 = vpop.permute.xlu0 %865  ;;  %v864_v45 = vpop.permute.xlu1 %863  ;;  %v1111_v52 = vpack.c.bf16 %v849_v51, %v838_v47  ;;  %v1115_v54 = vpack.c.bf16 %v862_v44, %v851_v5  ;;  %v1117_v7 = vpack.c.bf16 %v861_v53, %v850_v55 }
 0x479   : > { %v867_v56 = vsel %vm670_vm8, %v864_v45, %v866_v4  ;;  %v871_v18 = vsel %vm670_vm8, %v866_v4, %v864_v45 }
 0x47a   : > { %1112 = vmatprep.subr.bf16.mxu1 %v1111_v52  ;;  %v872_v11 = vmul.f32 %v867_v56, %v1378_v26  ;;  %v873_v15 = vmul.f32 %v871_v18, %v1381_v30  ;;  %v803_v30 = vld [vmem:[%s1498_s8] sm:$0xff] }
 0x47b   : > { %1114 = vmatpush1.bf16.msra.mxu1 %v1113_v43 }
 0x47c   : > { %v877_v6 = vpop.permute.xlu0 %876  ;;  %v875_v57 = vpop.permute.xlu1 %874  ;;  %1116 = vmatprep.subr.bf16.mxu1 %v1115_v54 }
 0x47d   : > { %v878_v58 = vsel %vm690_vm9, %v875_v57, %v877_v6  ;;  %v882_v60 = vsel %vm690_vm9, %v877_v6, %v875_v57 }
 0x47e   : > { %v883_v61 = vmul.f32 %v878_v58, %v1390_v36  ;;  %v884_v10 = vmul.f32 %v882_v60, %v1393_v37 }
 0x47f   : > { %1118 = vmatpush1.bf16.msra.mxu1 %v1117_v7 }
 0x480   : > { %v1121_v62 = vpack.c.bf16 %v883_v61, %v872_v11  ;;  %v888_v63 = vpop.permute.xlu0 %887  ;;  %v886_v2 = vpop.permute.xlu1 %885  ;;  %v1119_v3 = vpack.c.bf16 %v884_v10, %v873_v15 }
 0x481   : > { %v893_v8 = vsel %vm710_vm10, %v888_v63, %v886_v2  ;;  %v889_v9 = vsel %vm710_vm10, %v886_v2, %v888_v63 }
 0x482   : > { %v895_v12 = vmul.f32 %v1408_v40, %v893_v8  ;;  %1120 = vmatprep.subr.bf16.mxu1 %v1119_v3  ;;  %v894_v26 = vmul.f32 %v1414_v59, %v889_v9 }
 0x483   : > { %1122 = vmatpush1.bf16.msra.mxu1 %v1121_v62 }
 0x484   : > { %915 = vmatprep.subr.mxu1 %v895_v12 }
 0x487   : > { %916 = vmatpush1.msra.mxu1 %v894_v26 }
 0x488   : > { %1085 = vmatmul.mubr.msk.f32.vlgmr.msra.gmra.mrb[2].mxu1 %vm726_vm11, %v803_v30 }
 0x55b   : > { %v965_v36 = vpop.f32.mrb[2].mxu1 }
 0x55c   : > { %v970_v37 = vrot.slane %v965_v36, 4  ;;  %v967_v13 = vpop.f32.mrb[3].mxu1 }
 0x55d   : > { %v976_v14 = vrot.slane %v967_v13, 4 }
 0x55e   : > { %v971_v16 = vmax.f32 %v965_v36, %v970_v37 }
 0x55f   : > { %v977_v17 = vmax.f32 %v967_v13, %v976_v14 }
 0x560   : > { %v972_v40 = vrot.slane %v971_v16, 2 }
 0x561   : > { %v978_v19 = vrot.slane %v977_v17, 2 }
 0x562   : > { %v973_v20 = vmax.f32 %v971_v16, %v972_v40 }
 0x563   : > { %v979_v21 = vmax.f32 %v977_v17, %v978_v19 }
 0x564   : > { %v974_v22 = vrot.slane %v973_v20, 1 }
 0x565   : > { %v980_v59 = vrot.slane %v979_v21, 1 }
 0x566   : > { %v975_v23 = vmax.f32 %v973_v20, %v974_v22 }
 0x567   : > { %v981_v24 = vmax.f32 %v979_v21, %v980_v59 }
 0x568   : > { %v982_v25 = vmax.f32 %v975_v23, 1.0 }
 0x569   : > { %v983_v27 = vmax.f32 %v981_v24, 1.0 }
 0x56a   : > { %1151 = vrcp.f32 %v982_v25 }
 0x56b   : > { %1153 = vrcp.f32 %v983_v27 }
 0x574   : > { %v1152_v33 = vpop.eup %1151 }
 0x575   : > { %v1154_v34 = vpop.eup %1153  ;;  %v986_v31 = vmul.f32 %v1152_v33, %v355_v28 }
 0x576   : > { %v987_v32 = vmul.f32 %v1154_v34, %v356_v29 }
 0x577   : > { %1155 = vtanh.f32 %v986_v31 }
 0x578   : > { %1157 = vtanh.f32 %v987_v32 }
 0x581   : > { %v1156_v35 = vpop.eup %1155 }
 0x582   : > { %v1158_v39 = vpop.eup %1157  ;;  %v990_v41 = vmul.f32 %v1156_v35, %v982_v25 }
 0x583   : > { %v991_v46 = vmul.f32 %v1158_v39, %v983_v27 }
 0x584   : > { %v992_v47 = vadd.f32 %v990_v41, %v965_v36 }
 0x585   : > { %v993_v48 = vadd.f32 %v991_v46, %v967_v13 }
 0x586   : > { %v994_v49 = vadd.f32 %v992_v47, %v1241_v0 }
 0x587   : > { %v995_v38 = vadd.f32 %v993_v48, %v1243_v1 }
 0x588   : > { %996 = vst [vmem:[%s352_s29] sm:$0xff] %v994_v49 }
 0x589   : > { %997 = vst [vmem:[%s352_s29 + $0x8] sm:$0xff] %v995_v38 }
 0x58a PF: > { %s19_s30 = sadd.s32 1, %s1165_s30  }
 0x58b   : > { %p16_p4 = scmp.ge.s32.totalorder %s19_s30, 4  }
 0x58d   :  { %18 = sbr.rel (!%p16_p4) target bundleno = 1 (0x1), region = 89 }

</bundles_post_ra>
